<compile_context>
chip_gen: v6e
topology: v6e:2x2x1
jax: 0.10.0
libtpu: 0.0.40
codegen_flags: <defaults>
</compile_context>

<pallas_src>
import math

import jax
import jax.numpy as jnp
from jax import lax
from jax.experimental import pallas as pl
from jax.experimental.pallas import tpu as pltpu


def _halo_width(dilation: int) -> int:
    """Smallest power-of-two multiple of 128 covering the dilation halo."""
    hw = 128
    while hw < dilation:
        hw *= 2
    return hw


def _vmem_capacity_bytes() -> int:
    try:
        return int(pltpu.get_tpu_info().vmem_capacity_bytes)
    except Exception:  # interpret mode / unexpected runtime
        return 128 * 1024 * 1024


def _auto_tile_l(L: int, hw: int) -> int:
    """Largest multiple-of-hw divisor of L within the per-generation target."""
    target = 2048 if _vmem_capacity_bytes() <= 64 * 1024 * 1024 else 4096
    best, smallest = None, None
    t = hw
    while t <= L:
        if L % t == 0:
            if smallest is None:
                smallest = t
            if t <= target:
                best = t
        t += hw
    if best is None:
        best = smallest
    if best is None:
        raise ValueError(
            f"L={L} has no tile size that is a multiple of the halo width {hw}")
    return best


def _make_kernel(dilation: int, res_channels: int, tile_l: int, halo_w: int,
                 mxu_dtype):
    C, d, TL, HW = res_channels, dilation, tile_l, halo_w
    inv_sqrt2 = 1.0 / math.sqrt(2.0)

    def kernel(x_ref,      # (1, C, TL)        current tile of x
               xr_ref,     # (1, C, HW)        head of the next tile (clamped idx)
               dproj_ref,  # (1, C, 1)         precomputed diffusion projection
               cond_ref,   # (1, n_mels, TL)   conditioner (already mxu_dtype)
               wf_ref,     # (2C, 3C + n_mels) fused taps + cond weight
               bf_ref,     # (2C, 1)           fused bias (b_dil + b_cond)
               wo_ref,     # (2C, C)
               bo_ref,     # (2C, 1)
               res_ref,    # (1, C, TL)
               skip_ref,   # (1, C, TL)
               ltail_ref): # (C, TL) f32 scratch; lanes [0, d) carry the
                           # previous tile's last d lanes of y (left halo)
        t = pl.program_id(1)
        t_last = pl.num_programs(1) - 1

        # Sequence start: the conv's left zero padding.
        @pl.when(t == 0)
        def _():
            ltail_ref[...] = jnp.zeros_like(ltail_ref)

        x = x_ref[0]                         # (C, TL) f32
        dproj = dproj_ref[0]                 # (C, 1)  -> lane broadcast
        y = x + dproj

        lane = lax.broadcasted_iota(jnp.int32, (C, TL), 1)

        # y[.., j - d]: interior lanes roll within the tile (XLU); lanes
        # [0, d) come from the carried left halo (zeros at t == 0).
        y_rolled = pltpu.roll(y, d, axis=1)
        y_left = jnp.where(lane < d, ltail_ref[...], y_rolled)

        # y[.., j + d]: interior lanes roll within the tile; lanes [TL-d, TL)
        # come from the narrow next-tile view (zeros at the sequence end).
        xr = xr_ref[0]                                   # (C, HW)
        xr_tail = pltpu.roll(xr, HW - d, axis=1)         # halo -> lanes [HW-d, HW)
        if HW == TL:
            halo = xr_tail
        else:
            halo = jnp.concatenate(
                [jnp.zeros((C, TL - HW), xr_tail.dtype), xr_tail], axis=1)
        halo_y = jnp.where(t == t_last, 0.0, halo + dproj)
        y_right = jnp.where(lane >= TL - d, halo_y,
                            pltpu.roll(y, TL - d, axis=1))

        # Fused dilated conv (3 taps) + conditioner projection: one MXU matmul
        # with K = 3C + n_mels; operands built directly in mxu_dtype.
        stacked = jnp.concatenate(
            [y_left.astype(mxu_dtype), y.astype(mxu_dtype),
             y_right.astype(mxu_dtype), cond_ref[0]], axis=0)
        y2 = jnp.dot(wf_ref[...], stacked,
                     preferred_element_type=jnp.float32) + bf_ref[...]   # (2C, TL)

        # Gated activation — gate/filter split is a free sublane slice at row C.
        y3 = jax.nn.sigmoid(y2[:C, :]) * jnp.tanh(y2[C:, :])             # (C, TL)

        # output_projection (Conv1d kernel=1).
        y4 = jnp.dot(wo_ref[...], y3.astype(mxu_dtype),
                     preferred_element_type=jnp.float32) + bo_ref[...]   # (2C, TL)

        res_ref[0] = ((x + y4[:C, :]) * inv_sqrt2).astype(res_ref.dtype)
        skip_ref[0] = y4[C:, :].astype(skip_ref.dtype)

        # Carry this tile's last d lanes of y (now in lanes [0, d) of y_rolled)
        # to the next grid step.
        ltail_ref[...] = y_rolled

    return kernel


def _diffusion_projection(diffusion_step, params):
    """Linear(512 -> C), hoisted out of the kernel (M=1 matmul)."""
    return jnp.einsum("bi,ci->bc", diffusion_step, params["w_diff"],
                      precision=lax.Precision.HIGHEST) + params["b_diff"]


def residual_block_pallas(x, diffusion_step, conditioner, params, dilation,
                          *, tile_l=None, mxu_dtype=jnp.bfloat16):
    """x: (B, C, L); diffusion_step: (B, 512); conditioner: (B, n_mels, L)."""
    B, C, L = x.shape
    n_mels = conditioner.shape[1]
    if dilation < 1:
        raise ValueError("dilation must be >= 1")

    hw = _halo_width(dilation)
    if tile_l is None:
        tile_l = _auto_tile_l(L, hw)
    if L % tile_l != 0:
        # TODO(synk): handle a ragged last L-tile (pad-and-slice or BoundedSlice).
        raise ValueError(f"L={L} must be divisible by tile_l={tile_l}")
    if dilation >= tile_l or tile_l % hw != 0:
        # TODO(synk): multi-tile halo for dilation >= tile_l.
        raise ValueError(
            f"need dilation < tile_l and tile_l % {hw} == 0 "
            f"(got dilation={dilation}, tile_l={tile_l})")
    nT = L // tile_l
    blocks_per_tile = tile_l // hw
    n_halo_blocks = L // hw

    # Hoisted diffusion projection -> per-batch (C, 1) lane broadcast.
    dproj = _diffusion_projection(diffusion_step, params).reshape(B, C, 1)

    # Conditioner is only ever consumed as an MXU operand -> stream it from HBM
    # already in mxu_dtype (halves its read bytes in the bf16 path; no-op for f32).
    conditioner = conditioner.astype(mxu_dtype)

    # Fold the three dilated-conv taps + conditioner projection into one weight
    # (K = 3C + n_mels), and the two biases into one.
    w_dil = params["w_dil"]                                          # (2C, C, 3)
    w_fused = jnp.concatenate(
        [w_dil[:, :, 0], w_dil[:, :, 1], w_dil[:, :, 2],
         params["w_cond"][:, :, 0]], axis=1).astype(mxu_dtype)       # (2C, 3C+n_mels)
    b_fused = (params["b_dil"] + params["b_cond"]).reshape(2 * C, 1)
    w_out = params["w_out"][:, :, 0].astype(mxu_dtype)               # (2C, C)
    b_out = params["b_out"].reshape(2 * C, 1)

    kernel = _make_kernel(dilation, C, tile_l, hw, mxu_dtype)

    # Weights / biases: constant block index -> not re-fetched across grid steps.
    const2d = lambda shape: pl.BlockSpec(shape, lambda b, t: (0, 0))

    K1 = 3 * C + n_mels
    itemsize = lambda a: jnp.dtype(a.dtype).itemsize
    cost = pl.CostEstimate(
        flops=2 * B * L * 2 * C * (K1 + C),
        transcendentals=2 * B * L * C,
        bytes_accessed=int(
            B * C * L * itemsize(x) * (1.0 + hw / tile_l)         # x + right halo
            + B * n_mels * L * itemsize(conditioner)              # conditioner
            + 2 * B * C * L * itemsize(x)                         # res + skip
            + B * C * 4                                           # dproj
            + 2 * C * (K1 + C) * jnp.dtype(mxu_dtype).itemsize    # weights
            + 4 * C * 2 * 4))                                     # biases

    # ~75% of physical VMEM: raises the 32-MiB scoped default on 128-MiB parts
    # (v5e/v6e), leaves compiler headroom on 64-MiB parts (v7x).
    vmem_limit = min(int(_vmem_capacity_bytes() * 0.75), 100 * 1024 * 1024)

    res, skip = pl.pallas_call(
        kernel,
        out_shape=(jax.ShapeDtypeStruct((B, C, L), x.dtype),
                   jax.ShapeDtypeStruct((B, C, L), x.dtype)),
        grid_spec=pltpu.PrefetchScalarGridSpec(
            num_scalar_prefetch=0,
            grid=(B, nT),
            in_specs=[
                pl.BlockSpec((1, C, tile_l), lambda b, t: (b, 0, t)),      # x center
                pl.BlockSpec(                                              # right halo
                    (1, C, hw),
                    lambda b, t: (b, 0, jnp.minimum((t + 1) * blocks_per_tile,
                                                    n_halo_blocks - 1))),
                pl.BlockSpec((1, C, 1), lambda b, t: (b, 0, 0)),           # dproj
                pl.BlockSpec((1, n_mels, tile_l), lambda b, t: (b, 0, t)), # cond
                const2d((2 * C, K1)),                                      # w_fused
                const2d((2 * C, 1)),                                       # b_fused
                const2d((2 * C, C)),                                       # w_out
                const2d((2 * C, 1)),                                       # b_out
            ],
            out_specs=[
                pl.BlockSpec((1, C, tile_l), lambda b, t: (b, 0, t)),
                pl.BlockSpec((1, C, tile_l), lambda b, t: (b, 0, t)),
            ],
            scratch_shapes=[pltpu.VMEM((C, tile_l), jnp.float32)],         # left-halo carry
        ),
        compiler_params=pltpu.CompilerParams(
            # t is sequential ("arbitrary") because of the left-halo carry;
            # B stays "parallel" for megacore / v7x dual-TC sharding.
            dimension_semantics=("parallel", "arbitrary"),
            vmem_limit_bytes=vmem_limit),
        cost_estimate=cost,
    )(x, x, dproj, conditioner, w_fused, b_fused, w_out, b_out)
    return res, skip


def reference(x, diffusion_step, conditioner, params, dilation):
    """Pure-JAX f32 reference mirroring the PyTorch forward (NCL layout)."""
    C = x.shape[1]
    hp = lax.Precision.HIGHEST
    dproj = _diffusion_projection(diffusion_step, params)          # (B, C)
    y = x + dproj[:, :, None]
    cond = jnp.einsum("bml,om->bol", conditioner, params["w_cond"][:, :, 0],
                      precision=hp) + params["b_cond"][None, :, None]
    dil = lax.conv_general_dilated(
        y, params["w_dil"], window_strides=(1,),
        padding=[(dilation, dilation)], rhs_dilation=(dilation,),
        dimension_numbers=("NCH", "OIH", "NCH"), precision=hp)
    y2 = dil + params["b_dil"][None, :, None] + cond
    gate, filt = y2[:, :C], y2[:, C:]
    y3 = jax.nn.sigmoid(gate) * jnp.tanh(filt)
    y4 = jnp.einsum("bcl,oc->bol", y3, params["w_out"][:, :, 0],
                    precision=hp) + params["b_out"][None, :, None]
    residual, skip = y4[:, :C], y4[:, C:]
    return (x + residual) / math.sqrt(2.0), skip


def init_params(key, n_mels, C):
    """PyTorch-layout parameters (Linear: (out,in); Conv1d: (out,in,k))."""
    ks = jax.random.split(key, 8)
    lim = 1.0 / math.sqrt(512)
    w_diff = jax.random.uniform(ks[0], (C, 512), jnp.float32, -lim, lim)
    b_diff = jax.random.uniform(ks[1], (C,), jnp.float32, -lim, lim)
    std_dil = math.sqrt(2.0 / (C * 3))
    w_dil = jax.random.normal(ks[2], (2 * C, C, 3), jnp.float32) * std_dil
    lim_dil = 1.0 / math.sqrt(C * 3)
    b_dil = jax.random.uniform(ks[3], (2 * C,), jnp.float32, -lim_dil, lim_dil)
    std_cond = math.sqrt(2.0 / n_mels)
    w_cond = jax.random.normal(ks[4], (2 * C, n_mels, 1), jnp.float32) * std_cond
    lim_cond = 1.0 / math.sqrt(n_mels)
    b_cond = jax.random.uniform(ks[5], (2 * C,), jnp.float32, -lim_cond, lim_cond)
    std_out = math.sqrt(2.0 / C)
    w_out = jax.random.normal(ks[6], (2 * C, C, 1), jnp.float32) * std_out
    lim_out = 1.0 / math.sqrt(C)
    b_out = jax.random.uniform(ks[7], (2 * C,), jnp.float32, -lim_out, lim_out)
    return dict(w_diff=w_diff, b_diff=b_diff, w_dil=w_dil, b_dil=b_dil,
                w_cond=w_cond, b_cond=b_cond, w_out=w_out, b_out=b_out)


if __name__ == "__main__":
    B, C, L, n_mels = 2, 32, 1024, 16

    key = jax.random.PRNGKey(0)
    kx, kd, kc, kp = jax.random.split(key, 4)
    x = jax.random.normal(kx, (B, C, L), jnp.float32)
    diffusion_step = jax.random.normal(kd, (B, 512), jnp.float32)
    conditioner = jax.random.normal(kc, (B, n_mels, L), jnp.float32)
    params = init_params(kp, n_mels, C)

    def check(dilation, tile_l, mxu_dtype, tol, tag):
        res_gold, skip_gold = reference(x, diffusion_step, conditioner, params,
                                        dilation)
        res, skip = residual_block_pallas(x, diffusion_step, conditioner, params,
                                          dilation, tile_l=tile_l,
                                          mxu_dtype=mxu_dtype)
        jax.block_until_ready((res, skip))
        assert jnp.allclose(res, res_gold, atol=tol, rtol=tol), \
            f"residual mismatch ({tag})"
        assert jnp.allclose(skip, skip_gold, atol=tol, rtol=tol), \
            f"skip mismatch ({tag})"

    # Multi-tile sequence (carried left halo + narrow right-halo view),
    # f32 MXU operands -> tight check against the f32 reference.
    check(dilation=4, tile_l=256, mxu_dtype=jnp.float32, tol=1e-2, tag="f32 d=4")

    # Dilation > 128: halo-view width equals the tile width code path.
    check(dilation=160, tile_l=256, mxu_dtype=jnp.float32, tol=1e-2, tag="f32 d=160")

    # Default path: bf16 MXU operands, auto-sized (generation-aware) tile.
    check(dilation=4, tile_l=None, mxu_dtype=jnp.bfloat16, tol=5e-2, tag="bf16 d=4")

    print("KERNEL_OK")
</pallas_src>

<mosaic_0001>
module attributes {stable_mosaic.version = 11 : i64} {
  func.func @kernel(%arg0: i32, %arg1: i32, %arg2: memref<1x32x256xf32, #tpu.memory_space<vmem>>, %arg3: memref<1x32x128xf32, #tpu.memory_space<vmem>>, %arg4: memref<1x32x1xf32, #tpu.memory_space<vmem>>, %arg5: memref<1x16x256xf32, #tpu.memory_space<vmem>>, %arg6: memref<64x112xf32, #tpu.memory_space<vmem>>, %arg7: memref<64x1xf32, #tpu.memory_space<vmem>>, %arg8: memref<64x32xf32, #tpu.memory_space<vmem>>, %arg9: memref<64x1xf32, #tpu.memory_space<vmem>>, %arg10: memref<1x32x256xf32, #tpu.memory_space<vmem>>, %arg11: memref<1x32x256xf32, #tpu.memory_space<vmem>>, %arg12: memref<32x256xf32, #tpu.memory_space<vmem>>) attributes {dimension_semantics = [#tpu.dimension_semantics<parallel>, #tpu.dimension_semantics<arbitrary>], iteration_bounds = array<i64: 2, 4>, scalar_prefetch = 0 : i64, scratch_operands = 1 : i64, tpu.core_type = #tpu.core_type<tc>, window_params = [{transform_indices = @transform_0, window_bounds = array<i64: 1, 32, 256>}, {transform_indices = @transform_1, window_bounds = array<i64: 1, 32, 128>}, {transform_indices = @transform_2, window_bounds = array<i64: 1, 32, 1>}, {transform_indices = @transform_3, window_bounds = array<i64: 1, 16, 256>}, {pipeline_mode = #tpu.pipeline_mode<synchronous>, transform_indices = @transform_4, window_bounds = array<i64: 64, 112>}, {pipeline_mode = #tpu.pipeline_mode<synchronous>, transform_indices = @transform_5, window_bounds = array<i64: 64, 1>}, {pipeline_mode = #tpu.pipeline_mode<synchronous>, transform_indices = @transform_6, window_bounds = array<i64: 64, 32>}, {pipeline_mode = #tpu.pipeline_mode<synchronous>, transform_indices = @transform_7, window_bounds = array<i64: 64, 1>}, {transform_indices = @transform_8, window_bounds = array<i64: 1, 32, 256>}, {transform_indices = @transform_9, window_bounds = array<i64: 1, 32, 256>}]} {
    %c0_i32 = arith.constant 0 : i32
    %0 = arith.cmpi eq, %arg1, %c0_i32 : i32
    %1 = arith.extui %0 : i1 to i32
    %c0_i32_0 = arith.constant 0 : i32
    %2 = arith.cmpi ne, %1, %c0_i32_0 : i32
    scf.if %2 {
      %cst_37 = arith.constant 0.000000e+00 : f32
      %63 = vector.broadcast %cst_37 : f32 to vector<32x256xf32>
      %c0_38 = arith.constant 0 : index
      %c0_39 = arith.constant 0 : index
      %64 = vector.load %arg12[%c0_38, %c0_39] : memref<32x256xf32, #tpu.memory_space<vmem>>, vector<32x256xf32>
      tpu.vector_store %arg12[%c0_38, %c0_39], %63 {strides = array<i32>} : memref<32x256xf32, #tpu.memory_space<vmem>>, vector<32x256xf32>,
    } else {
    }
    %c0 = arith.constant 0 : index
    %c0_1 = arith.constant 0 : index
    %c0_2 = arith.constant 0 : index
    %3 = vector.load %arg2[%c0, %c0_1, %c0_2] : memref<1x32x256xf32, #tpu.memory_space<vmem>>, vector<1x32x256xf32>
    %4 = vector.shape_cast %3 : vector<1x32x256xf32> to vector<32x256xf32>
    %c0_3 = arith.constant 0 : index
    %c0_4 = arith.constant 0 : index
    %c0_5 = arith.constant 0 : index
    %5 = vector.load %arg4[%c0_3, %c0_4, %c0_5] : memref<1x32x1xf32, #tpu.memory_space<vmem>>, vector<1x32x1xf32>
    %6 = vector.shape_cast %5 : vector<1x32x1xf32> to vector<32x1xf32>
    %7 = vector.broadcast %6 : vector<32x1xf32> to vector<32x256xf32>
    %8 = arith.addf %4, %7 : vector<32x256xf32>
    %9 = tpu.iota {dimensions = array<i32: 1>} : vector<32x256xi32>
    %c4_i32 = arith.constant 4 : i32
    %10 = tpu.dynamic_rotate %8 by %c4_i32 dim 1 : vector<32x256xf32>, i32 -> vector<32x256xf32>
    %c4_i32_6 = arith.constant 4 : i32
    %11 = vector.broadcast %c4_i32_6 : i32 to vector<32x256xi32>
    %12 = arith.cmpi slt, %9, %11 : vector<32x256xi32>
    %c0_7 = arith.constant 0 : index
    %c0_8 = arith.constant 0 : index
    %13 = vector.load %arg12[%c0_7, %c0_8] : memref<32x256xf32, #tpu.memory_space<vmem>>, vector<32x256xf32>
    %14 = arith.select %12, %13, %10 : vector<32x256xi1>, vector<32x256xf32>
    %c0_9 = arith.constant 0 : index
    %c0_10 = arith.constant 0 : index
    %c0_11 = arith.constant 0 : index
    %15 = vector.load %arg3[%c0_9, %c0_10, %c0_11] : memref<1x32x128xf32, #tpu.memory_space<vmem>>, vector<1x32x128xf32>
    %16 = vector.shape_cast %15 : vector<1x32x128xf32> to vector<32x128xf32>
    %c124_i32 = arith.constant 124 : i32
    %17 = tpu.dynamic_rotate %16 by %c124_i32 dim 1 : vector<32x128xf32>, i32 -> vector<32x128xf32>
    %cst = arith.constant 0.000000e+00 : f32
    %18 = vector.broadcast %cst : f32 to vector<32x128xf32>
    %19 = tpu.concatenate %18, %17 in 1 : vector<32x128xf32>, vector<32x128xf32> -> vector<32x256xf32>
    %c3_i32 = arith.constant 3 : i32
    %20 = arith.cmpi eq, %arg1, %c3_i32 : i32
    %21 = vector.broadcast %6 : vector<32x1xf32> to vector<32x256xf32>
    %22 = arith.addf %19, %21 : vector<32x256xf32>
    %cst_12 = arith.constant 0.000000e+00 : f32
    %23 = vector.broadcast %cst_12 : f32 to vector<32x256xf32>
    %24 = arith.select %20, %23, %22 : vector<32x256xf32>
    %c252_i32 = arith.constant 252 : i32
    %25 = vector.broadcast %c252_i32 : i32 to vector<32x256xi32>
    %26 = arith.cmpi sge, %9, %25 : vector<32x256xi32>
    %c252_i32_13 = arith.constant 252 : i32
    %27 = tpu.dynamic_rotate %8 by %c252_i32_13 dim 1 : vector<32x256xf32>, i32 -> vector<32x256xf32>
    %28 = arith.select %26, %24, %27 : vector<32x256xi1>, vector<32x256xf32>
    %c0_14 = arith.constant 0 : index
    %c0_15 = arith.constant 0 : index
    %c0_16 = arith.constant 0 : index
    %29 = vector.load %arg5[%c0_14, %c0_15, %c0_16] : memref<1x16x256xf32, #tpu.memory_space<vmem>>, vector<1x16x256xf32>
    %30 = vector.shape_cast %29 : vector<1x16x256xf32> to vector<16x256xf32>
    %31 = tpu.concatenate %14, %8, %28, %30 in 0 : vector<32x256xf32>, vector<32x256xf32>, vector<32x256xf32>, vector<16x256xf32> -> vector<112x256xf32>
    %c0_17 = arith.constant 0 : index
    %c0_18 = arith.constant 0 : index
    %32 = vector.load %arg6[%c0_17, %c0_18] : memref<64x112xf32, #tpu.memory_space<vmem>>, vector<64x112xf32>
    %cst_19 = arith.constant dense<0.000000e+00> : vector<64x256xf32>
    %33 = tpu.matmul %32, %31, %cst_19 {dimension_numbers = #tpu.dot_dimension_numbers<[1], [0], [0], [1], [0, 0, 1, 1], [], []>} : vector<64x112xf32>, vector<112x256xf32>, vector<64x256xf32> -> vector<64x256xf32>
    %c0_20 = arith.constant 0 : index
    %c0_21 = arith.constant 0 : index
    %34 = vector.load %arg7[%c0_20, %c0_21] : memref<64x1xf32, #tpu.memory_space<vmem>>, vector<64x1xf32>
    %35 = vector.broadcast %34 : vector<64x1xf32> to vector<64x256xf32>
    %36 = arith.addf %33, %35 : vector<64x256xf32>
    %37 = vector.extract_strided_slice %36 {offsets = [0, 0], sizes = [32, 256], strides = [1, 1]} : vector<64x256xf32> to vector<32x256xf32>
    %38 = arith.negf %37 : vector<32x256xf32>
    %39 = math.exp %38 : vector<32x256xf32>
    %cst_22 = arith.constant 1.000000e+00 : f32
    %40 = vector.broadcast %cst_22 : f32 to vector<32x256xf32>
    %41 = arith.addf %40, %39 : vector<32x256xf32>
    %42 = arith.divf %40, %41 : vector<32x256xf32>
    %43 = vector.extract_strided_slice %36 {offsets = [32, 0], sizes = [32, 256], strides = [1, 1]} : vector<64x256xf32> to vector<32x256xf32>
    %44 = math.tanh %43 : vector<32x256xf32>
    %45 = arith.mulf %42, %44 : vector<32x256xf32>
    %c0_23 = arith.constant 0 : index
    %c0_24 = arith.constant 0 : index
    %46 = vector.load %arg8[%c0_23, %c0_24] : memref<64x32xf32, #tpu.memory_space<vmem>>, vector<64x32xf32>
    %cst_25 = arith.constant dense<0.000000e+00> : vector<64x256xf32>
    %47 = tpu.matmul %46, %45, %cst_25 {dimension_numbers = #tpu.dot_dimension_numbers<[1], [0], [0], [1], [0, 0, 1, 1], [], []>} : vector<64x32xf32>, vector<32x256xf32>, vector<64x256xf32> -> vector<64x256xf32>
    %c0_26 = arith.constant 0 : index
    %c0_27 = arith.constant 0 : index
    %48 = vector.load %arg9[%c0_26, %c0_27] : memref<64x1xf32, #tpu.memory_space<vmem>>, vector<64x1xf32>
    %49 = vector.broadcast %48 : vector<64x1xf32> to vector<64x256xf32>
    %50 = arith.addf %47, %49 : vector<64x256xf32>
    %51 = vector.extract_strided_slice %50 {offsets = [0, 0], sizes = [32, 256], strides = [1, 1]} : vector<64x256xf32> to vector<32x256xf32>
    %52 = arith.addf %4, %51 : vector<32x256xf32>
    %cst_28 = arith.constant 0.707106769 : f32
    %53 = vector.broadcast %cst_28 : f32 to vector<32x256xf32>
    %54 = arith.mulf %52, %53 : vector<32x256xf32>
    %c0_29 = arith.constant 0 : index
    %c0_30 = arith.constant 0 : index
    %c0_31 = arith.constant 0 : index
    %55 = vector.load %arg10[%c0_29, %c0_30, %c0_31] : memref<1x32x256xf32, #tpu.memory_space<vmem>>, vector<1x32x256xf32>
    %56 = vector.shape_cast %55 : vector<1x32x256xf32> to vector<32x256xf32>
    %57 = vector.shape_cast %54 : vector<32x256xf32> to vector<1x32x256xf32>
    tpu.vector_store %arg10[%c0_29, %c0_30, %c0_31], %57 {strides = array<i32>} : memref<1x32x256xf32, #tpu.memory_space<vmem>>, vector<1x32x256xf32>,
    %58 = vector.extract_strided_slice %50 {offsets = [32, 0], sizes = [32, 256], strides = [1, 1]} : vector<64x256xf32> to vector<32x256xf32>
    %c0_32 = arith.constant 0 : index
    %c0_33 = arith.constant 0 : index
    %c0_34 = arith.constant 0 : index
    %59 = vector.load %arg11[%c0_32, %c0_33, %c0_34] : memref<1x32x256xf32, #tpu.memory_space<vmem>>, vector<1x32x256xf32>
    %60 = vector.shape_cast %59 : vector<1x32x256xf32> to vector<32x256xf32>
    %61 = vector.shape_cast %58 : vector<32x256xf32> to vector<1x32x256xf32>
    tpu.vector_store %arg11[%c0_32, %c0_33, %c0_34], %61 {strides = array<i32>} : memref<1x32x256xf32, #tpu.memory_space<vmem>>, vector<1x32x256xf32>,
    %c0_35 = arith.constant 0 : index
    %c0_36 = arith.constant 0 : index
    %62 = vector.load %arg12[%c0_35, %c0_36] : memref<32x256xf32, #tpu.memory_space<vmem>>, vector<32x256xf32>
    tpu.vector_store %arg12[%c0_35, %c0_36], %10 {strides = array<i32>} : memref<32x256xf32, #tpu.memory_space<vmem>>, vector<32x256xf32>,
    return
  }
  func.func @transform_0(%arg0: i32, %arg1: i32) -> (i32, i32, i32) {
    %c0_i32 = arith.constant 0 : i32
    %c0_i32_0 = arith.constant 0 : i32
    return %arg0, %c0_i32, %arg1 : i32, i32, i32
  }
  func.func @transform_1(%arg0: i32, %arg1: i32) -> (i32, i32, i32) {
    %c1_i32 = arith.constant 1 : i32
    %0 = arith.addi %arg1, %c1_i32 : i32
    %c2_i32 = arith.constant 2 : i32
    %1 = arith.muli %0, %c2_i32 : i32
    %c7_i32 = arith.constant 7 : i32
    %2 = arith.minsi %1, %c7_i32 : i32
    %c0_i32 = arith.constant 0 : i32
    %c0_i32_0 = arith.constant 0 : i32
    return %arg0, %c0_i32, %2 : i32, i32, i32
  }
  func.func @transform_2(%arg0: i32, %arg1: i32) -> (i32, i32, i32) {
    %c0_i32 = arith.constant 0 : i32
    %c0_i32_0 = arith.constant 0 : i32
    %c0_i32_1 = arith.constant 0 : i32
    return %arg0, %c0_i32, %c0_i32_0 : i32, i32, i32
  }
  func.func @transform_3(%arg0: i32, %arg1: i32) -> (i32, i32, i32) {
    %c0_i32 = arith.constant 0 : i32
    %c0_i32_0 = arith.constant 0 : i32
    return %arg0, %c0_i32, %arg1 : i32, i32, i32
  }
  func.func @transform_4(%arg0: i32, %arg1: i32) -> (i32, i32) {
    %c0_i32 = arith.constant 0 : i32
    %c0_i32_0 = arith.constant 0 : i32
    %c0_i32_1 = arith.constant 0 : i32
    return %c0_i32, %c0_i32_0 : i32, i32
  }
  func.func @transform_5(%arg0: i32, %arg1: i32) -> (i32, i32) {
    %c0_i32 = arith.constant 0 : i32
    %c0_i32_0 = arith.constant 0 : i32
    %c0_i32_1 = arith.constant 0 : i32
    return %c0_i32, %c0_i32_0 : i32, i32
  }
  func.func @transform_6(%arg0: i32, %arg1: i32) -> (i32, i32) {
    %c0_i32 = arith.constant 0 : i32
    %c0_i32_0 = arith.constant 0 : i32
    %c0_i32_1 = arith.constant 0 : i32
    return %c0_i32, %c0_i32_0 : i32, i32
  }
  func.func @transform_7(%arg0: i32, %arg1: i32) -> (i32, i32) {
    %c0_i32 = arith.constant 0 : i32
    %c0_i32_0 = arith.constant 0 : i32
    %c0_i32_1 = arith.constant 0 : i32
    return %c0_i32, %c0_i32_0 : i32, i32
  }
  func.func @transform_8(%arg0: i32, %arg1: i32) -> (i32, i32, i32) {
    %c0_i32 = arith.constant 0 : i32
    %c0_i32_0 = arith.constant 0 : i32
    return %arg0, %c0_i32, %arg1 : i32, i32, i32
  }
  func.func @transform_9(%arg0: i32, %arg1: i32) -> (i32, i32, i32) {
    %c0_i32 = arith.constant 0 : i32
    %c0_i32_0 = arith.constant 0 : i32
    return %arg0, %c0_i32, %arg1 : i32, i32, i32
  }
}

</mosaic_0001>

<bundles_post_ra>
// kernel: tpu_custom_call.1
= control target key start
LH: loop header
LB: loop body
LE: loop exit
PB: predicated region body
PF: predicated region fallthrough
CT: control target
= control target key end

     0   :  { %s2625_s0 = inlined_call_operand.hbm [shape: f32[2,32,1024], index: 0, kind: input, shape index: {}]   ;;  %s2626_s1 = inlined_call_operand.hbm [shape: f32[2,32,1024], index: 1, kind: input, shape index: {}]   ;;  %s2627_s2 = inlined_call_operand.vmem [shape: f32[2,32,1], index: 2, kind: input, shape index: {}]   ;;  %s2628_s3 = inlined_call_operand.vmem [shape: f32[2,16,1024], index: 3, kind: input, shape index: {}]   ;;  %s2629_s4 = inlined_call_operand.hbm [shape: f32[64,112], index: 4, kind: input, shape index: {}]   ;;  %s2630_s5 = inlined_call_operand.vmem [shape: f32[64,1], index: 5, kind: input, shape index: {}]   ;;  %s2631_s6 = inlined_call_operand.vmem [shape: f32[64,32], index: 6, kind: input, shape index: {}]   ;;  %s2632_s7 = inlined_call_operand.vmem [shape: f32[64,1], index: 7, kind: input, shape index: {}]   ;;  %s2633_s8 = inlined_call_operand.hbm [shape: f32[2,32,1024], index: 8, kind: output, shape index: {0}]   ;;  %s2634_s9 = inlined_call_operand.hbm [shape: f32[2,32,1024], index: 9, kind: output, shape index: {1}]  }
   0x1   :  { %2665 = sst [smem:[#allocation34_spill]] %s2625_s0 }
   0x2   :  { %2666 = sst [smem:[#allocation35_spill]] %s2627_s2 }
   0x3   :  { %2667 = sst [smem:[#allocation36_spill]] %s2629_s4 }
   0x4   :  { %2668 = sst [smem:[#allocation37_spill]] %s2630_s5 }
   0x5   :  { %2669 = sst [smem:[#allocation38_spill]] %s2631_s6 }
   0x6   :  { %2670 = sst [smem:[#allocation39_spill]] %s2632_s7 }
   0x7   :  { %2671 = sst [smem:[#allocation40_spill]] %s2633_s8 }
   0x8   :  { %2672 = sst [smem:[#allocation41_spill]] %s2634_s9 }
   0x9   :  { %15 = vsyncpa [#allocation4], 0 }
   0xa   :  { %17 = vsyncpa [#allocation4 + $0x1], 0 }
   0xb   :  { %18 = vsyncpa [#allocation7], 0 }
   0xc   :  { %20 = vsyncpa [#allocation7 + $0x1], 0 }
   0xd   :  { %21 = vsyncpa [#allocation5], 0 }
   0xe   :  { %23 = vsyncpa [#allocation5 + $0x1], 0 }
   0xf   :  { %24 = vsyncpa [#allocation12], 0 }
  0x10   :  { %26 = vsyncpa [#allocation12 + $0x1], 0  ;;  %s1978_s30 = smov 0   ;;  %s1980_s10 = smov 0  }
  0x11   :  { %s1982_s11 = smov 0   ;;  %s1984_s12 = smov 0  }
  0x12   :  { %s1986_s13 = smov 0   ;;  %s1988_s14 = smov 0  }
  0x13   :  { %s1990_s15 = smov 0   ;;  %s1992_s16 = smov 0  }
  0x14   :  { %s1994_s17 = smov 0   ;;  %s1996_s18 = smov 0  }
  0x15   :  { %s1998_s19 = smov 0  }
  0x16 LB: > { %2673 = sst [smem:[#allocation18_spill]] %s1870_s10  ;;  %s2034_s20 = sadd.s32 4294967295, %s1906_s19   ;;  %s1906_s19 = sphi %s1998_s19, %s32_s19   ;;  %s1902_s18 = sphi %s1996_s18, %s2741_s18   ;;  %s1898_s17 = sphi %s1994_s17, %s2733_s17   ;;  %s1894_s16 = sphi %s1992_s16, %s2740_s16   ;;  %s1890_s15 = sphi %s1990_s15, %s2739_s15   ;;  %s1886_s14 = sphi %s1988_s14, %s2731_s14   ;;  %s1882_s13 = sphi %s1986_s13, %s2738_s13   ;;  %s1878_s12 = sphi %s1984_s12, %s2737_s12   ;;  %s1874_s11 = sphi %s1982_s11, %s2736_s11   ;;  %s1870_s10 = sphi %s1980_s10, %s2735_s10   ;;  %s1866_s30 = sphi %s1978_s30, %s2728_s30  }
  0x17   : > { %2674 = sst [smem:[#allocation19_spill]] %s1878_s12  ;;  %s41_s22 = sadd.s32 1, %s1898_s17 }
  0x18   : > { %2675 = sst [smem:[#allocation20_spill]] %s1886_s14  ;;  %s44_s23 = sadd.s32 1, %s1902_s18 }
  0x19   : > { %2676 = sst [smem:[#allocation21_spill]] %s1890_s15  ;;  %p42_p0 = scmp.ge.s32.totalorder %s41_s22, 4 }
  0x1a   : > { %2677 = sst [smem:[#allocation22_spill]] %s1894_s16  ;;  %s53_s24 = sadd.s32 1, %s1886_s14 }
  0x1b   : > { %2678 = sst [smem:[#allocation23_spill]] %s1898_s17  ;;  %p60_p1 = scmp.ne.s32.totalorder %s1886_s14, %s1882_s13 }
  0x1c   : > { %2679 = sst [smem:[#allocation24_spill]] %s1906_s19  ;;  %p61_p2 = scmp.eq.s32.totalorder %s1906_s19, 0 }
  0x1d   : > { %2680 = sst [smem:[#allocation25_spill]] %s2034_s20  ;;  %s2743_s22 = smov (%p42_p0, %s41_s22), 0 }
  0x1e   : > { %2681 = sst [smem:[#allocation26_spill]] %s2743_s22  ;;  %s2745_s23 = smov (!%p42_p0, %s44_s23), %s1902_s18 }
  0x1f   : > { %s49_s25 = ssub.s32 %s1898_s17, %s2743_s22  ;;  %p2053_p3 = por %p61_p2, %p60_p1 }
  0x20   : > { %p46_p4 = scmp.ge.s32.totalorder %s2745_s23, 2  ;;  %p2641_p5 = scmp.ne.s32.totalorder %s1882_s13, %s1878_s12 }
  0x21   : > { %p2643_p6 = scmp.eq.s32.totalorder %s2034_s20, 0  ;;  %s2061_s27 = sshll.u32 %s1898_s17, 1 }
  0x22   : > { %s2747_s23 = smov (%p46_p4, %s2745_s23), 0  ;;  %s1484_s29 = sadd.s32 2, %s2061_s27 }
  0x23   : > { %2683 = sst [smem:[#allocation27_spill]] %s2747_s23  ;;  %p2070_p7 = por %p2643_p6, %p2641_p5 }
  0x24   : > { %s48_s21 = ssub.s32 %s1902_s18, %s2747_s23  ;;  %p78_p8 = scmp.lt.s32.totalorder %s1484_s29, 7 }
  0x25   : > { %s2684_s28 = scalar_select %p2070_p7, 1, 0 }
  0x26   : > { %s50_s9 = sor.u32 %s49_s25, %s48_s21  ;;  %s1485_s17 = sshll.u32 %s2743_s22, 1 }
  0x27   : > { %2685 = sst [smem:[#allocation28_spill]] %s2684_s28  ;;  %p51_p9 = scmp.eq.s32.totalorder %s50_s9, 0 }
  0x28   : > { %s1486_s8 = sadd.s32 2, %s1485_s17  ;;  %s2749_s29 = smov (!%p78_p8, %s1484_s29), 7 }
  0x29   : > { %s2081_s6 = scalar_select %p51_p9, %s1886_s14, %s53_s24  }
  0x2a   : > { %p82_p10 = scmp.lt.s32.totalorder %s1486_s8, 7  ;;  %s89_s23 = sadd.s32 1, %s1874_s11 }
  0x2b   : > { %2686 = sst [smem:[#allocation29_spill]] %s2081_s6  ;;  %p96_p11 = scmp.ne.s32.totalorder %s1874_s11, %s1870_s10 }
  0x2c   : > { %p102_p12 = scmp.ne.s32.totalorder %s1870_s10, %s1866_s30  ;;  %s2751_s8 = smov (!%p82_p10, %s1486_s8), 7 }
  0x2d   : > { %p2090_p13 = por %p96_p11, %p61_p2  ;;  %s85_s24 = ssub.s32 %s2749_s29, %s2751_s8 }
  0x2e   : > { %p2096_p0 = por %p102_p12, %p2643_p6  ;;  %p266_p4 = scmp.eq.s32.totalorder %s2034_s20, 7 }
  0x2f   : > { %s2687_s9 = scalar_select %p2090_p13, 1, 0 }
  0x30   : > { %s2688_s17 = scalar_select %p2096_p0, 1, 0 }
  0x31   : > { %s86_s25 = sor.u32 %s85_s24, %s48_s21  ;;  %s2690_s22 = sadd.s32 4294967294, %s1906_s19  }
  0x32   : > { %2689 = sst [smem:[#allocation30_spill]] %s2688_s17  ;;  %p272_p8 = scmp.eq.s32.totalorder %s2690_s22, 7 }
  0x33   : > { %p87_p9 = scmp.eq.s32.totalorder %s86_s25, 0  ;;  %p2107_p5 = por %p266_p4, %p60_p1 }
  0x34   : > { %p2693_p2 = scmp.ne.s32.totalorder %s1882_s13, %s1878_s12  ;;  %p1424_p11 = scmp.ge.s32.totalorder %s1906_s19, 1 }
  0x35   : > { %s2691_s30 = scalar_select %p2107_p5, 1, 0 }
  0x36   : > { %p2114_p10 = por %p272_p8, %p2693_p2  ;;  %p307_p12 = scmp.lt.s32.totalorder %s1906_s19, 9 }
  0x37   : > { %2692 = sst [smem:[#allocation31_spill]] %s2691_s30  ;;  %s1908_s21 = smov [#allocation9]  }
  0x38   : > { %s2694_s6 = scalar_select %p2114_p10, 1, 0 }
  0x39   : > { %s2120_s7 = scalar_select %p87_p9, %s1874_s11, %s89_s23  }
  0x3a   : > { %2695 = sst [smem:[#allocation32_spill]] %s2694_s6  ;;  %p2123_p6 = pnand %p1424_p11, %p307_p12 }
  0x3b   : > { %2696 = sst [smem:[#allocation33_spill]] %s2120_s7  ;;  %s319_s22 = sshll.u32 %s1908_s21, 4  ;;  %s320_s22 = int_to_ptr.vmem [resolvable:$true] %s319_s22 }
  0x3c   : > { %p1502_p1 = pneg %p2123_p6  ;;  %p2698_p4 = scmp.eq.s32.totalorder %s2034_s20, 0 }
  0x3d   : > { %s1681_s24 = scalar_lea.vmem %s320_s22, 1024  ;;  %p1689_p9 = scmp.lt.s32.totalorder %s320_s22, %s320_s22 }
  0x3e   : > { %p1503_p5 = pnand %p1502_p1, %p2698_p4  ;;  %p1682_p2 = scmp.ne.s32.totalorder %s320_s22, %s1681_s24 }
  0x3f   : > { %p1690_p7 = scmp.lt.s32.totalorder %s1681_s24, %s1681_s24 }
  0x40   : > { %p1672_p8 = pneg %p1503_p5 }
  0x41   : > { %p1691_p13 = por %p1690_p7, %p1689_p9 }
  0x42   : > { %p1684_p10 = pnand %p1682_p2, %p1672_p8 }
  0x44   : > { %p1685_p0 = pneg %p1684_p10 }
  0x46   : > { %p1692_p11 = pnand %p1691_p13, %p1685_p0 }
  0x48   : > { %1695 = shalt.err (!%p1692_p11)
}
  0x49   : > { %s1909_s23 = smov 128   ;;  %s1910_s25 = smov 8  }
  0x4a   : > { %s2699_s4 = sld [smem:[#allocation36_spill]]  ;;  %p1426_p12 = scmp.ge.s32.totalorder %s1906_s19, 8 }
  0x4b   : > { %s2136_s21 = sand.u32 (!%p1426_p12), 1, %s1886_s14   ;;  %s1429_s24 = sshll.u32 (!%p1426_p12), %s1902_s18, 5 }
  0x4c   : > { %338 = sbr.rel (%p1426_p12) target bundleno = 121 (0x79), region = 32  ;;  %s1427_s12 = sshll.u32 (!%p1426_p12), %s2136_s21, 6 }
  0x4d   : > { %s352_s30 = sadd.s32 (!%p1426_p12), %s2061_s27, %s1429_s24  ;;  %s346_s6 = scalar_lea.vmem (!%p1426_p12), [#allocation3], %s1427_s12 }
  0x4e   : > { %s1430_s5 = sshll.u32 (!%p1426_p12), %s352_s30, 7  ;;  %s355_s7 = sshll.u32 (!%p1426_p12), %s346_s6, 4  ;;  %s356_s7 = int_to_ptr.vmem [resolvable:$true] %s355_s7 }
  0x4f   : > { %s2700_s0 = sld [smem:[#allocation34_spill]] (!%p1426_p12)  ;;  %s343_s15 = scalar_lea.sflag (!%p1426_p12), [#allocation4], %s2136_s21 }
  0x50   : > { %1505 = dma.hbm_to_vmem [thread:$0]  (!%p1503_p5), %s2699_s4, 1024, %s320_s22, [#allocation7], %s1909_s23, %s1909_s23, %s1910_s25  }
  0x51   : > { %s365_s4 = sand.u32 1, %s1906_s19   ;;  %s1708_s2 = scalar_lea.vmem %s356_s7, 1024 }
  0x52   : > { %p1709_p5 = scmp.ne.s32.totalorder %s356_s7, %s1708_s2  ;;  %s1911_s14 = smov [#allocation3]  }
  0x53   : > { %s1712_s16 = sshll.u32 %s1911_s14, 4  ;;  %s1713_s16 = int_to_ptr.vmem [resolvable:$false] %s1712_s16 }
  0x54   : > { %p1710_p7 = pnand %p1709_p5, %p2053_p3  ;;  %s1714_s17 = scalar_lea.vmem %s1713_s16, 2048 }
  0x55   : > { %s354_s25 = scalar_lea.hbm %s2700_s0, %s1430_s5  ;;  %p1715_p0 = scmp.lt.s32.totalorder %s356_s7, %s1713_s16 }
  0x56   : > { %p1711_p13 = pneg %p1710_p7  ;;  %p1716_p10 = scmp.lt.s32.totalorder %s1714_s17, %s1708_s2 }
  0x58   : > { %p1717_p1 = por %p1716_p10, %p1715_p0 }
  0x5a   : > { %p1718_p4 = pnand %p1717_p1, %p1711_p13 }
  0x5c   : > { %1721 = shalt.err (!%p1718_p4)
}
  0x5d   : > { %s1912_s12 = smov 1024   ;;  %s1913_s5 = smov 256  }
  0x5e   : > { %s1914_s30 = smov 16   ;;  %s367_s6 = sand.u32 1, %s1874_s11  }
  0x5f   : > { %1492 = dma.hbm_to_vmem [thread:$0]  (%p2053_p3), %s354_s25, 1024, %s356_s7, %s343_s15, %s1912_s12, %s1913_s5, %s1914_s30  }
  0x60   : > { %s1431_s14 = sshll.u32 %s367_s6, 5  ;;  %s378_s22 = sadd.s32 %s1429_s24, %s2749_s29 }
  0x61   : > { %s1434_s16 = sshll.u32 %s378_s22, 7  ;;  %s369_s0 = scalar_lea.vmem [#allocation6], %s1431_s14 }
  0x62   : > { %s380_s23 = scalar_lea.hbm %s2626_s1, %s1434_s16  ;;  %s381_s19 = sshll.u32 %s369_s0, 4  ;;  %s382_s19 = int_to_ptr.vmem [resolvable:$true] %s381_s19 }
  0x63   : > { %s366_s10 = scalar_lea.sflag [#allocation7], %s365_s4  ;;  %s1734_s20 = scalar_lea.vmem %s382_s19, 512 }
  0x64   : > { %p1735_p8 = scmp.ne.s32.totalorder %s382_s19, %s1734_s20  ;;  %p2701_p2 = scmp.ne.s32.totalorder %s2687_s9, 0 }
  0x65   : > { %s1915_s28 = smov [#allocation6]  }
  0x66   : > { %p1736_p9 = pnand %p1735_p8, %p2701_p2  ;;  %s1738_s15 = sshll.u32 %s1915_s28, 4  ;;  %s1739_s15 = int_to_ptr.vmem [resolvable:$false] %s1738_s15 }
  0x67   : > { %s1740_s7 = scalar_lea.vmem %s1739_s15, 1024  ;;  %p1741_p12 = scmp.lt.s32.totalorder %s382_s19, %s1739_s15 }
  0x68   : > { %p1737_p11 = pneg %p1736_p9  ;;  %p1742_p5 = scmp.lt.s32.totalorder %s1740_s7, %s1734_s20 }
  0x6a   : > { %p1743_p7 = por %p1742_p5, %p1741_p12 }
  0x6c   : > { %p1744_p13 = pnand %p1743_p7, %p1737_p11 }
  0x6e   : > { %1747 = shalt.err (!%p1744_p13)
}
  0x6f   : > { %s1916_s29 = smov 128   ;;  %s1917_s24 = smov 8  }
  0x70   : > { %1493 = dma.hbm_to_vmem [thread:$0]  (%p2701_p2), %s380_s23, 512, %s382_s19, %s366_s10, %s1912_s12, %s1916_s29, %s1917_s24  }
  0x71   : > { %398 = sbr.rel (!%p2053_p3) target bundleno = 121 (0x79), region = 48  ;;  %s1435_s0 = sshll.u32 (%p2053_p3), %s2136_s21, 5 }
  0x72   : > { %s1437_s4 = sshll.u32 (%p2053_p3), %s1902_s18, 4  ;;  %s402_s9 = scalar_lea.vmem (%p2053_p3), [#allocation8], %s1435_s0 }
  0x73   : > { %s405_s28 = sadd.s32 (%p2053_p3), %s2061_s27, %s1437_s4 }
  0x74   : > { %s1438_s25 = sshll.u32 (%p2053_p3), %s405_s28, 3 }
  0x75   : > { %s407_s30 = scalar_lea.vmem (%p2053_p3), %s2628_s3, %s1438_s25 }
  0x76   : > { %v420_v0 = vld [vmem:[%s407_s30] sm:$0xff]  ;;  %v422_v1 = vld [vmem:[%s407_s30 + $0x8] sm:$0xff] }
  0x77   : > { %v424_v2 = vld [vmem:[%s407_s30 + $0x40] sm:$0xff]  ;;  %421 = vst [vmem:[%s402_s9] sm:$0xff] %v420_v0  ;;  %423 = vst [vmem:[%s402_s9 + $0x8] sm:$0xff] %v422_v1  ;;  %v426_v3 = vld [vmem:[%s407_s30 + $0x48] sm:$0xff] }
  0x78   : > { %425 = vst [vmem:[%s402_s9 + $0x10] sm:$0xff] %v424_v2  ;;  %427 = vst [vmem:[%s402_s9 + $0x18] sm:$0xff] %v426_v3 }
  0x79 PF: > { %436 = sbr.rel (%p2123_p6) target bundleno = 940 (0x3ac), region = 71  ;;  %s2702_s10 = sld [smem:[#allocation28_spill]] (!%p2123_p6) }
  0x7a   : > { %s2176_s19 = sand.u32 (!%p2123_p6), 1, %s1882_s13  }
  0x7b   : > { %s1440_s26 = sshll.u32 (!%p2123_p6), %s2176_s19, 6  ;;  %s439_s27 = scalar_lea.sflag (!%p2123_p6), [#allocation4], %s2176_s19 }
  0x7c   : > { %s2180_s21 = scalar_lea.vmem (!%p2123_p6), [#allocation3], %s1440_s26 }
  0x7f   : > { %p2703_p3 = scmp.ne.s32.totalorder %s2702_s10, 0 }
  0x81   : > { %1845 = dma.done.wait (%p2703_p3), %s439_s27, 1024  }
  0x82   : > { %1847 = vsyncadd (%p2703_p3), %s439_s27, 4294966272  ;;  %s2704_s12 = sld [smem:[#allocation25_spill]] }
  0x83   : > { %s2705_s6 = sld [smem:[#allocation18_spill]] }
  0x84   : > { %s2706_s14 = sld [smem:[#allocation30_spill]] }
  0x88   : > { %s447_s8 = sand.u32 1, %s2704_s12  }
  0x89   : > { %s449_s22 = sand.u32 1, %s2705_s6   ;;  %s448_s2 = scalar_lea.sflag [#allocation7], %s447_s8 }
  0x8a   : > { %s1441_s16 = sshll.u32 %s449_s22, 5  ;;  %p2707_p6 = scmp.ne.s32.totalorder %s2706_s14, 0 }
  0x8b   : > { %s2188_s17 = scalar_lea.vmem [#allocation6], %s1441_s16 }
  0x8c   : > { %1849 = dma.done.wait (%p2707_p6), %s448_s2, 512  }
  0x8d   : > { %1851 = vsyncadd (%p2707_p6), %s448_s2, 4294966784  ;;  %s1442_s23 = sshll.u32 %s2176_s19, 5  ;;  %p2708_p0 = scmp.eq.s32.totalorder %s2704_s12, 0 }
  0x8e   : > { %s2195_s15 = scalar_lea.vmem [#allocation8], %s1442_s23 }
  0x8f   : > { %1853 = dma.done.wait (%p2708_p0), [#allocation7], 1024   ;;  %p2709_p10 = pmov %p2708_p0 }
  0x90   : > { %s2710_s7 = sld [smem:[#allocation22_spill]]  ;;  %s2206_s25 = scalar_lea.vmem [#allocation10], %s1440_s26 }
  0x91   : > { %1855 = vsyncadd (%p2709_p10), [#allocation7], 4294966272  ;;  %s2711_s4 = sld [smem:[#allocation35_spill]]  ;;  %s2208_s20 = scalar_lea.vmem [#allocation11], %s1440_s26 }
  0x92   : > { %s2712_s5 = sld [smem:[#allocation21_spill]] }
  0x96   : > { %p521_p1 = scmp.lt.s32.totalorder %s2710_s7, 1 }
  0x98   : > { %s2753_s7 = smov (!%p521_p1, %s2710_s7), 1  ;;  %p1448_p4 = scmp.ne.s32.totalorder %s2712_s5, 0 }
  0x99   : > { %s1489_s29 = sshll.u32 %s2753_s7, 5 }
  0x9a   : > { %s525_s28 = scalar_lea.vmem %s2711_s4, %s1489_s29  ;;  %532 = sbr.rel (%p1448_p4) target bundleno = 162 (0xa2), region = 91 }
  0x9f   : > { %v1918_v4 = vmov 0.0  }
  0xa0   : > { %533 = vst [vmem:[#allocation2 + $0x30] sm:$0xff] %v1918_v4  ;;  %535 = vst [vmem:[#allocation2 + $0x18] sm:$0xff] %v1918_v4 }
  0xa1   : > { %537 = vst [vmem:[#allocation2 + $0x8] sm:$0xff] %v1918_v4  ;;  %539 = vst [vmem:[#allocation2 + $0x28] sm:$0xff] %v1918_v4 }
  0xa2 PF: > { %v552_v5 = vld [vmem:[%s525_s28 + $0x18] sm:$0xff]  ;;  %v550_v6 = vld [vmem:[%s525_s28 + $0x8] sm:$0xff]  ;;  %v1919_v7 = vmov 0   ;;  %v551_v8 = vld [vmem:[%s525_s28 + $0x10] sm:$0xff]  ;;  %s1920_s30 = smov 124   ;;  %s1921_s9 = smov 4   ;;  %v581_v55 = vlaneseq }
  0xa3   : > { %1621 = vset.pattern.permute.xlu1 %v1919_v7  ;;  %1620 = vset.pattern.permute.xlu0 %v1919_v7  ;;  %v549_v9 = vld [vmem:[%s525_s28] sm:$0xff]  ;;  %v629_v10 = vld [vmem:[%s2188_s17 + $0x18] sm:$0xff]  ;;  %v628_v11 = vld [vmem:[%s2188_s17 + $0x10] sm:$0xff]  ;;  %v1922_v38 = vmov 0.0   ;;  %s2713_s27 = sld [smem:[#allocation37_spill]]  ;;  %vm753_vm4 = vcmask 916480  }
  0xa4   : > { %570 = vperm.xlu0 %1620, %v552_v5   ;;  %560 = vperm.xlu1 %1621, %v550_v6   ;;  %v627_v12 = vld [vmem:[%s2188_s17 + $0x8] sm:$0xff]  ;;  %v626_v13 = vld [vmem:[%s2188_s17] sm:$0xff]  ;;  %v696_v14 = vld [vmem:[%s2195_s15 + $0x18] sm:$0xff]  ;;  %s2714_s28 = sld [smem:[#allocation39_spill]]  ;;  %v2362_v58 = vand.u32 127, %v581_v55  ;;  %vm1011_vm5 = vcmask 261120  }
  0xa5   : > { %v695_v15 = vld [vmem:[%s2195_s15 + $0x10] sm:$0xff]  ;;  %782 = vmatprep.subr.mxu0 %v696_v14  ;;  %v694_v16 = vld [vmem:[%s2195_s15 + $0x8] sm:$0xff]  ;;  %v693_v17 = vld [vmem:[%s2195_s15] sm:$0xff]  ;;  %842 = vmatprep.mubr.f32.mxu0 %v1922_v38  ;;  %s2718_s24 = sld [smem:[#allocation38_spill]]  ;;  %s1210_s29 = sshll.u32 %s2206_s25, 4  ;;  %s2516_s29 = int_to_ptr.vmem [resolvable:$true] %s1210_s29 }
  0xa6   : > { %783 = vmatpush1.msra.mxu0 %v695_v15  ;;  %v2224_v18 = vld [vmem:[%s2180_s21 + $0x30] sm:$0xff]  ;;  %v2227_v19 = vld [vmem:[%s2180_s21 + $0x38] sm:$0xff]  ;;  %v2240_v23 = vld [vmem:[%s2180_s21 + $0x20] sm:$0xff]  ;;  %1100 = vmatprep.mubr.f32.mxu1 %v1922_v38  ;;  %v583_v60 = vadd.s32 128, %v2362_v58  ;;  %vm676_vm1 = vcmp.lt.s32.totalorder %v2362_v58, 124  ;;  %vm600_vm3 = vcmp.lt.s32.totalorder %v2362_v58, 4 }
  0xa7   : > { %784 = vmatprep.subr.mxu0 %v694_v16  ;;  %v2243_v24 = vld [vmem:[%s2180_s21 + $0x28] sm:$0xff]  ;;  %v2250_v25 = vld [vmem:[%s2180_s21 + $0x10] sm:$0xff]  ;;  %v2253_v26 = vld [vmem:[%s2180_s21 + $0x18] sm:$0xff]  ;;  %s2719_s17 = sld [smem:[#allocation22_spill]]  ;;  %s1190_s26 = scalar_lea.sflag [#allocation5], %s2176_s19 }
  0xa8   : > { %565 = vperm.xlu0 %1620, %v551_v8   ;;  %555 = vperm.xlu1 %1621, %v549_v9   ;;  %v2280_v33 = vld [vmem:[%s2180_s21] sm:$0xff]  ;;  %v2283_v34 = vld [vmem:[%s2180_s21 + $0x8] sm:$0xff]  ;;  %vm659_vm2 = vcmp.ge.s32.totalorder %v583_v60, 252  ;;  %v699_v0 = vld [vmem:[#allocation9 + $0x10] sm:$0xff]  ;;  %s2720_s5 = sld [smem:[#allocation40_spill]]  ;;  %s1748_s21 = scalar_lea.vmem %s2516_s29, 1024 }
  0xa9   : > { %785 = vmatpush1.msra.mxu0 %v693_v17  ;;  %v707_v39 = vld [vmem:[%s2713_s27 + $0x10] sm:$0xff]  ;;  %v708_v40 = vld [vmem:[%s2713_s27 + $0x18] sm:$0xff]  ;;  %v705_v41 = vld [vmem:[%s2713_s27] sm:$0xff]  ;;  %s2721_s10 = sld [smem:[#allocation31_spill]]  ;;  %p1749_p2 = scmp.ne.s32.totalorder %s2516_s29, %s1748_s21 }
  0xaa   : > { %v706_v42 = vld [vmem:[%s2713_s27 + $0x8] sm:$0xff]  ;;  %v711_v43 = vld [vmem:[%s2713_s27 + $0x30] sm:$0xff]  ;;  %v712_v44 = vld [vmem:[%s2713_s27 + $0x38] sm:$0xff]  ;;  %s1923_s12 = smov [#allocation10]  }
  0xab   : > { %v709_v45 = vld [vmem:[%s2713_s27 + $0x20] sm:$0xff]  ;;  %v710_v46 = vld [vmem:[%s2713_s27 + $0x28] sm:$0xff]  ;;  %v966_v49 = vld [vmem:[%s2714_s28 + $0x18] sm:$0xff]  ;;  %s1752_s6 = sshll.u32 %s1923_s12, 4  ;;  %s1753_s6 = int_to_ptr.vmem [resolvable:$false] %s1752_s6 }
  0xac   : > { %636 = vrot.lane.b32.xlu0 %v629_v10, %s1920_s30  ;;  %634 = vrot.lane.b32.xlu1 %v628_v11, %s1920_s30  ;;  %v964_v47 = vld [vmem:[%s2714_s28 + $0x8] sm:$0xff]  ;;  %v963_v48 = vld [vmem:[%s2714_s28] sm:$0xff]  ;;  %v700_v58 = vld [vmem:[#allocation9 + $0x18] sm:$0xff]  ;;  %s1754_s14 = scalar_lea.vmem %s1753_s6, 2048  ;;  %p1755_p5 = scmp.lt.s32.totalorder %s2516_s29, %s1753_s6 }
  0xad   : > { %v965_v50 = vld [vmem:[%s2714_s28 + $0x10] sm:$0xff]  ;;  %v968_v51 = vld [vmem:[%s2714_s28 + $0x28] sm:$0xff]  ;;  %v967_v52 = vld [vmem:[%s2714_s28 + $0x20] sm:$0xff]  ;;  %p1756_p7 = scmp.lt.s32.totalorder %s1754_s14, %s1748_s21 }
  0xae   : > { %v970_v53 = vld [vmem:[%s2714_s28 + $0x38] sm:$0xff]  ;;  %v969_v54 = vld [vmem:[%s2714_s28 + $0x30] sm:$0xff] }
  0xaf   : > { %p2722_p9 = scmp.ne.s32.totalorder %s2721_s10, 0  ;;  %p1757_p13 = por %p1756_p7, %p1755_p5 }
  0xb0   : > { %632 = vrot.lane.b32.xlu0 %v627_v12, %s1920_s30  ;;  %630 = vrot.lane.b32.xlu1 %v626_v13, %s1920_s30 }
  0xb1   : > { %p1750_p11 = pnand %p1749_p2, %p2722_p9 }
  0xb3   : > { %p1751_p12 = pneg %p1750_p11 }
  0xb5   : > { %p1758_p3 = pnand %p1757_p13, %p1751_p12 }
 0x11f   : > { %v2229_v20 = vpop.permute.xlu0 %570  ;;  %v2265_v30 = vpop.permute.xlu1 %560 }
 0x120   : > { %v2233_v21 = vadd.f32 %v2229_v20, %v2224_v18  ;;  %v2237_v22 = vadd.f32 %v2229_v20, %v2227_v19  ;;  %v2269_v31 = vadd.f32 %v2265_v30, %v2250_v25  ;;  %v2273_v32 = vadd.f32 %v2265_v30, %v2253_v26 }
 0x122   : > { %674 = vrot.lane.b32.xlu1 %v2237_v22, %s1920_s30  ;;  %666 = vrot.lane.b32.xlu0 %v2233_v21, %s1920_s30 }
 0x123   : > { %v2255_v27 = vpop.permute.xlu0 %565  ;;  %v2289_v35 = vpop.permute.xlu1 %555 }
 0x124   : > { %v2259_v28 = vadd.f32 %v2255_v27, %v2240_v23  ;;  %v2263_v29 = vadd.f32 %v2255_v27, %v2243_v24  ;;  %v2293_v36 = vadd.f32 %v2289_v35, %v2280_v33  ;;  %v2297_v37 = vadd.f32 %v2289_v35, %v2283_v34 }
 0x126   : > { %672 = vrot.lane.b32.xlu0 %v2263_v29, %s1920_s30  ;;  %664 = vrot.lane.b32.xlu1 %v2259_v28, %s1920_s30 }
 0x127   : > { %v637_v56 = vpop.permute.xlu0 %636  ;;  %v635_v57 = vpop.permute.xlu1 %634 }
 0x128   : > { %v646_v63 = vadd.f32 %v637_v56, %v2229_v20  ;;  %v644_v4 = vadd.f32 %v635_v57, %v2255_v27 }
 0x12a   : > { %670 = vrot.lane.b32.xlu1 %v2273_v32, %s1920_s30  ;;  %662 = vrot.lane.b32.xlu0 %v2269_v31, %s1920_s30 }
 0x12b   : > { %v633_v61 = vpop.permute.xlu0 %632  ;;  %v631_v62 = vpop.permute.xlu1 %630 }
 0x12c   : > { %v642_v11 = vadd.f32 %v633_v61, %v2265_v30  ;;  %v640_v20 = vadd.f32 %v631_v62, %v2289_v35  ;;  %v697_v62 = vld [vmem:[#allocation9] sm:$0xff] }
 0x12e   : > { %668 = vrot.lane.b32.xlu1 %v2297_v37, %s1920_s30  ;;  %660 = vrot.lane.b32.xlu0 %v2293_v36, %s1920_s30 }
 0x132   : > { %598 = vrot.lane.b32.xlu1 %v2237_v22, %s1921_s9  ;;  %590 = vrot.lane.b32.xlu0 %v2233_v21, %s1921_s9 }
 0x136   : > { %596 = vrot.lane.b32.xlu1 %v2263_v29, %s1921_s9  ;;  %588 = vrot.lane.b32.xlu0 %v2259_v28, %s1921_s9 }
 0x13a   : > { %594 = vrot.lane.b32.xlu1 %v2273_v32, %s1921_s9  ;;  %586 = vrot.lane.b32.xlu0 %v2269_v31, %s1921_s9 }
 0x13e   : > { %592 = vrot.lane.b32.xlu1 %v2297_v37, %s1921_s9  ;;  %584 = vrot.lane.b32.xlu0 %v2293_v36, %s1921_s9  ;;  %s2715_s9 = sld [smem:[#allocation21_spill]] }
 0x142   : > { %725 = vperm.xlu1 %1621, %v707_v39   ;;  %730 = vperm.xlu0 %1620, %v708_v40  }
 0x144   : > { %p638_p8 = scmp.eq.s32.totalorder %s2715_s9, 3  ;;  %s1475_s23 = sshll.u32 %s2715_s9, 1 }
 0x146   : > { %715 = vperm.xlu1 %1621, %v705_v41   ;;  %720 = vperm.xlu0 %1620, %v706_v42   ;;  %s647_s15 = scalar_select %p638_p8, 1, 0 }
 0x148   : > { %v648_v59 = vstv %s647_s15  ;;  %s1476_s15 = sshll.u32 %s2719_s17, 5 }
 0x149   : > { %vm2366_vm0 = vcmp.eq.s32.totalorder %v648_v59, 1  ;;  %s2499_s7 = sadd.s32 %s1476_s15, %s1475_s23 }
 0x14a   : > { %745 = vperm.xlu1 %1621, %v711_v43   ;;  %750 = vperm.xlu0 %1620, %v712_v44   ;;  %v657_v3 = vsel %vm2366_vm0, 0.0, %v646_v63  ;;  %v655_v10 = vsel %vm2366_vm0, 0.0, %v644_v4  ;;  %v653_v17 = vsel %vm2366_vm0, 0.0, %v642_v11  ;;  %v651_v42 = vsel %vm2366_vm0, 0.0, %v640_v20  ;;  %v698_v63 = vld [vmem:[#allocation9 + $0x8] sm:$0xff]  ;;  %v704_v4 = vld [vmem:[#allocation9 + $0x38] sm:$0xff] }
 0x14b   : > { %s1477_s9 = sshll.u32 %s2499_s7, 7 }
 0x14c   : > { %s2514_s30 = scalar_lea.hbm %s2720_s5, %s1477_s9 }
 0x14e   : > { %735 = vperm.xlu1 %1621, %v709_v45   ;;  %740 = vperm.xlu0 %1620, %v710_v46   ;;  %v616_v45 = vld [vmem:[#allocation2 + $0x28] sm:$0xff] }
 0x152   : > { %978 = vperm.xlu1 %1621, %v964_v47   ;;  %973 = vperm.xlu0 %1620, %v963_v48  }
 0x156   : > { %988 = vperm.xlu1 %1621, %v966_v49   ;;  %983 = vperm.xlu0 %1620, %v965_v50   ;;  %v614_v50 = vld [vmem:[#allocation2 + $0x8] sm:$0xff] }
 0x15a   : > { %998 = vperm.xlu1 %1621, %v968_v51   ;;  %993 = vperm.xlu0 %1620, %v967_v52  }
 0x15e   : > { %1008 = vperm.xlu1 %1621, %v970_v53   ;;  %1003 = vperm.xlu0 %1620, %v969_v54  }
 0x194   : > { %v675_v1 = vpop.permute.xlu1 %674  ;;  %v667_v2 = vpop.permute.xlu0 %666 }
 0x195   : > { %v684_v5 = vsel %vm676_vm1, %v675_v1, %v667_v2  ;;  %v680_v7 = vsel %vm676_vm1, %v667_v2, %v675_v1  ;;  %v701_v1 = vld [vmem:[#allocation9 + $0x20] sm:$0xff]  ;;  %v702_v2 = vld [vmem:[#allocation9 + $0x28] sm:$0xff] }
 0x196   : > { %v692_v6 = vsel %vm659_vm2, %v657_v3, %v684_v5  ;;  %v703_v3 = vld [vmem:[#allocation9 + $0x30] sm:$0xff] }
 0x197   : > { %786 = vmatprep.subr.mxu0 %v692_v6 }
 0x198   : > { %787 = vmatpush1.msra.mxu0 %v680_v7  ;;  %v673_v8 = vpop.permute.xlu0 %672  ;;  %v665_v9 = vpop.permute.xlu1 %664 }
 0x199   : > { %v683_v12 = vsel %vm676_vm1, %v673_v8, %v665_v9  ;;  %v679_v14 = vsel %vm676_vm1, %v665_v9, %v673_v8 }
 0x19a   : > { %v690_v13 = vsel %vm659_vm2, %v655_v10, %v683_v12 }
 0x19b   : > { %788 = vmatprep.subr.mxu0 %v690_v13 }
 0x19c   : > { %789 = vmatpush1.msra.mxu0 %v679_v14  ;;  %v671_v15 = vpop.permute.xlu1 %670  ;;  %v663_v16 = vpop.permute.xlu0 %662 }
 0x19d   : > { %v682_v27 = vsel %vm676_vm1, %v671_v15, %v663_v16  ;;  %v678_v39 = vsel %vm676_vm1, %v663_v16, %v671_v15 }
 0x19e   : > { %v688_v30 = vsel %vm659_vm2, %v653_v17, %v682_v27 }
 0x19f   : > { %790 = vmatprep.subr.mxu0 %v688_v30 }
 0x1a0   : > { %791 = vmatpush1.msra.mxu0 %v678_v39  ;;  %v669_v40 = vpop.permute.xlu1 %668  ;;  %v661_v41 = vpop.permute.xlu0 %660 }
 0x1a1   : > { %v681_v43 = vsel %vm676_vm1, %v669_v40, %v661_v41  ;;  %v677_v44 = vsel %vm676_vm1, %v661_v41, %v669_v40 }
 0x1a2   : > { %v686_v35 = vsel %vm659_vm2, %v651_v42, %v681_v43 }
 0x1a3   : > { %792 = vmatprep.subr.mxu0 %v686_v35 }
 0x1a4   : > { %v599_v46 = vpop.permute.xlu1 %598  ;;  %793 = vmatpush1.msra.mxu0 %v677_v44  ;;  %v591_v47 = vpop.permute.xlu0 %590 }
 0x1a5   : > { %v608_v48 = vsel %vm600_vm3, %v599_v46, %v591_v47  ;;  %794 = vmatprep.subr.mxu0 %v2237_v22  ;;  %v604_v49 = vsel %vm600_vm3, %v591_v47, %v599_v46 }
 0x1a6   : > { %1187 = vst [vmem:[#allocation2 + $0x28] sm:$0xff] %v608_v48  ;;  %795 = vmatpush1.msra.mxu0 %v2233_v21  ;;  %v612_v21 = vld [vmem:[#allocation2 + $0x18] sm:$0xff] }
 0x1a7   : > { %796 = vmatprep.subr.mxu0 %v2263_v29 }
 0x1a8   : > { %v597_v51 = vpop.permute.xlu1 %596  ;;  %797 = vmatpush1.msra.mxu0 %v2259_v28  ;;  %v589_v52 = vpop.permute.xlu0 %588 }
 0x1a9   : > { %v607_v53 = vsel %vm600_vm3, %v597_v51, %v589_v52  ;;  %798 = vmatprep.subr.mxu0 %v2273_v32  ;;  %v603_v22 = vsel %vm600_vm3, %v589_v52, %v597_v51  ;;  %v624_v32 = vsel %vm600_vm3, %v616_v45, %v608_v48 }
 0x1aa   : > { %1185 = vst [vmem:[#allocation2 + $0x8] sm:$0xff] %v607_v53  ;;  %799 = vmatpush1.msra.mxu0 %v2269_v31  ;;  %v622_v31 = vsel %vm600_vm3, %v614_v50, %v607_v53 }
 0x1ab   : > { %800 = vmatprep.subr.mxu0 %v2297_v37  ;;  %v610_v37 = vld [vmem:[#allocation2 + $0x30] sm:$0xff] }
 0x1ac   : > { %v595_v29 = vpop.permute.xlu1 %594  ;;  %801 = vmatpush1.msra.mxu0 %v2293_v36  ;;  %v587_v54 = vpop.permute.xlu0 %586 }
 0x1ad   : > { %v606_v28 = vsel %vm600_vm3, %v595_v29, %v587_v54  ;;  %802 = vmatprep.subr.mxu0 %v604_v49  ;;  %v602_v55 = vsel %vm600_vm3, %v587_v54, %v595_v29 }
 0x1ae   : > { %1183 = vst [vmem:[#allocation2 + $0x18] sm:$0xff] %v606_v28  ;;  %803 = vmatpush1.msra.mxu0 %v624_v32  ;;  %v620_v59 = vsel %vm600_vm3, %v612_v21, %v606_v28 }
 0x1af   : > { %804 = vmatprep.subr.mxu0 %v603_v22 }
 0x1b0   : > { %v593_v56 = vpop.permute.xlu1 %592  ;;  %805 = vmatpush1.msra.mxu0 %v622_v31  ;;  %v585_v36 = vpop.permute.xlu0 %584 }
 0x1b1   : > { %v605_v57 = vsel %vm600_vm3, %v593_v56, %v585_v36  ;;  %806 = vmatprep.subr.mxu0 %v602_v55  ;;  %v601_v60 = vsel %vm600_vm3, %v585_v36, %v593_v56 }
 0x1b2   : > { %1181 = vst [vmem:[#allocation2 + $0x30] sm:$0xff] %v605_v57  ;;  %807 = vmatpush1.msra.mxu0 %v620_v59  ;;  %v618_v61 = vsel %vm600_vm3, %v610_v37, %v605_v57 }
 0x1b3   : > { %808 = vmatprep.subr.mxu0 %v601_v60 }
 0x1b4   : > { %809 = vmatpush1.msra.mxu0 %v618_v61 }
 0x1b5   : > { %1449 = vmatmul.mubr.msk.f32.vlgmr.msra.gmra.mxu0 %vm753_vm4, %v697_v62 }
 0x1b6   : > { %848 = vmatprep.mubr.f32.mxu0 %v1922_v38 }
 0x1b9   : > { %1450 = vmatmul.mubr.msk.f32.gmra.mxu0 %vm753_vm4, %v698_v63 }
 0x1ba   : > { %854 = vmatprep.mubr.f32.mxu0 %v1922_v38 }
 0x1bd   : > { %1451 = vmatmul.mubr.msk.f32.gmra.mxu0 %vm753_vm4, %v699_v0  ;;  %v726_v5 = vpop.permute.xlu1 %725  ;;  %v731_v6 = vpop.permute.xlu0 %730 }
 0x1be   : > { %860 = vmatprep.mubr.f32.mxu0 %v1922_v38 }
 0x1c1   : > { %1452 = vmatmul.mubr.msk.f32.gmra.mxu0 %vm753_vm4, %v700_v58  ;;  %v716_v7 = vpop.permute.xlu1 %715  ;;  %v721_v13 = vpop.permute.xlu0 %720 }
 0x1c2   : > { %866 = vmatprep.mubr.f32.mxu0 %v1922_v38 }
 0x1c5   : > { %1453 = vmatmul.mubr.msk.f32.gmra.mxu0 %vm753_vm4, %v701_v1  ;;  %v751_v60 = vpop.permute.xlu0 %750  ;;  %v746_v0 = vpop.permute.xlu1 %745 }
 0x1c6   : > { %872 = vmatprep.mubr.f32.mxu0 %v1922_v38 }
 0x1c9   : > { %1454 = vmatmul.mubr.msk.f32.gmra.mxu0 %vm753_vm4, %v702_v2 }
 0x1ca   : > { %878 = vmatprep.mubr.f32.mxu0 %v1922_v38 }
 0x1cd   : > { %1455 = vmatmul.mubr.msk.f32.gmra.mxu0 %vm753_vm4, %v703_v3 }
 0x1ce   : > { %884 = vmatprep.mubr.f32.mxu0 %v1922_v38 }
 0x1d1   : > { %1456 = vmatmul.mubr.msk.f32.gmra.mxu0 %vm753_vm4, %v704_v4 }
 0x275   : > { %v844_v8 = vpop.f32.mrf.mxu0 }
 0x276   : > { %v845_v9 = vadd.f32 %v844_v8, %v716_v7 }
 0x277   : > { %v846_v10 = vpop.f32.mrf.mxu0 }
 0x278   : > { %v1457_v11 = vmul.f32 -1.442695, %v845_v9  ;;  %v847_v12 = vadd.f32 %v846_v10, %v716_v7  ;;  %v741_v7 = vpop.permute.xlu0 %740  ;;  %v736_v10 = vpop.permute.xlu1 %735 }
 0x279   : > { %v850_v14 = vpop.f32.mrf.mxu0 }
 0x27a   : > { %v1458_v15 = vmul.f32 -1.442695, %v847_v12  ;;  %v851_v16 = vadd.f32 %v850_v14, %v721_v13  ;;  %1622 = vpow2.f32 %v1457_v11 }
 0x27b   : > { %v852_v17 = vpop.f32.mrf.mxu0 }
 0x27c   : > { %v1459_v20 = vmul.f32 -1.442695, %v851_v16  ;;  %v853_v27 = vadd.f32 %v852_v17, %v721_v13  ;;  %1624 = vpow2.f32 %v1458_v15 }
 0x27d   : > { %v856_v30 = vpop.f32.mrf.mxu0 }
 0x27e   : > { %1626 = vpow2.f32 %v1459_v20  ;;  %v1460_v39 = vmul.f32 -1.442695, %v853_v27  ;;  %v857_v40 = vadd.f32 %v856_v30, %v726_v5 }
 0x27f   : > { %v858_v41 = vpop.f32.mrf.mxu0 }
 0x280   : > { %1628 = vpow2.f32 %v1460_v39  ;;  %v1461_v42 = vmul.f32 -1.442695, %v857_v40  ;;  %v859_v43 = vadd.f32 %v858_v41, %v726_v5 }
 0x281   : > { %v862_v35 = vpop.f32.mrf.mxu0 }
 0x282   : > { %1630 = vpow2.f32 %v1461_v42  ;;  %v1462_v44 = vmul.f32 -1.442695, %v859_v43  ;;  %v863_v45 = vadd.f32 %v862_v35, %v731_v6 }
 0x283   : > { %v864_v46 = vpop.f32.mrf.mxu0 }
 0x284   : > { %1632 = vpow2.f32 %v1462_v44  ;;  %v1463_v47 = vmul.f32 -1.442695, %v863_v45  ;;  %v865_v48 = vadd.f32 %v864_v46, %v731_v6 }
 0x285   : > { %v868_v49 = vpop.f32.mrf.mxu0 }
 0x286   : > { %1634 = vpow2.f32 %v1463_v47  ;;  %v1464_v50 = vmul.f32 -1.442695, %v865_v48  ;;  %v869_v13 = vadd.f32 %v868_v49, %v736_v10 }
 0x287   : > { %v870_v51 = vpop.f32.mrf.mxu0  ;;  %v1623_v52 = vpop.eup %1622 }
 0x288   : > { %1636 = vpow2.f32 %v1464_v50  ;;  %v915_v54 = vadd.f32 1.0, %v1623_v52  ;;  %v871_v12 = vadd.f32 %v870_v51, %v736_v10 }
 0x289   : > { %v874_v53 = vpop.f32.mrf.mxu0  ;;  %v1625_v22 = vpop.eup %1624 }
 0x28a   : > { %v916_v32 = vadd.f32 1.0, %v1625_v22  ;;  %1638 = vrcp.f32 %v915_v54  ;;  %v875_v11 = vadd.f32 %v874_v53, %v741_v7  ;;  %v957_v54 = vld [vmem:[%s2718_s24 + $0x10] sm:$0xff] }
 0x28b   : > { %v1627_v21 = vpop.eup %1626  ;;  %v876_v29 = vpop.f32.mrf.mxu0 }
 0x28c   : > { %v917_v31 = vadd.f32 1.0, %v1627_v21  ;;  %1640 = vrcp.f32 %v916_v32  ;;  %v877_v9 = vadd.f32 %v876_v29, %v741_v7  ;;  %v955_v21 = vld [vmem:[%s2718_s24] sm:$0xff]  ;;  %v956_v29 = vld [vmem:[%s2718_s24 + $0x8] sm:$0xff] }
 0x28d   : > { %v1629_v28 = vpop.eup %1628  ;;  %v880_v55 = vpop.f32.mrf.mxu0  ;;  %v959_v32 = vld [vmem:[%s2718_s24 + $0x20] sm:$0xff] }
 0x28e   : > { %v918_v56 = vadd.f32 1.0, %v1629_v28  ;;  %1642 = vrcp.f32 %v917_v31  ;;  %v881_v8 = vadd.f32 %v880_v55, %v746_v0  ;;  %v958_v28 = vld [vmem:[%s2718_s24 + $0x18] sm:$0xff]  ;;  %v960_v55 = vld [vmem:[%s2718_s24 + $0x28] sm:$0xff]  ;;  %v961_v31 = vld [vmem:[%s2718_s24 + $0x30] sm:$0xff] }
 0x28f   : > { %v1631_v37 = vpop.eup %1630  ;;  %v882_v36 = vpop.f32.mrf.mxu0 }
 0x290   : > { %v919_v57 = vadd.f32 1.0, %v1631_v37  ;;  %1644 = vrcp.f32 %v918_v56  ;;  %v883_v6 = vadd.f32 %v882_v36, %v746_v0  ;;  %v962_v37 = vld [vmem:[%s2718_s24 + $0x38] sm:$0xff]  ;;  %v974_v56 = vpop.permute.xlu0 %973 }
 0x291   : > { %v1633_v59 = vpop.eup %1632  ;;  %v886_v61 = vpop.f32.mrf.mxu0 }
 0x292   : > { %v920_v62 = vadd.f32 1.0, %v1633_v59  ;;  %1646 = vrcp.f32 %v919_v57  ;;  %v887_v4 = vadd.f32 %v886_v61, %v751_v60 }
 0x293   : > { %v1635_v63 = vpop.eup %1634  ;;  %v888_v58 = vpop.f32.mrf.mxu0 }
 0x294   : > { %v921_v1 = vadd.f32 1.0, %v1635_v63  ;;  %v889_v2 = vadd.f32 %v888_v58, %v751_v60  ;;  %1648 = vrcp.f32 %v920_v62  ;;  %v979_v62 = vpop.permute.xlu1 %978 }
 0x295   : > { %v1637_v3 = vpop.eup %1636 }
 0x296   : > { %1650 = vrcp.f32 %v921_v1  ;;  %v922_v5 = vadd.f32 1.0, %v1637_v3 }
 0x297   : > { %1652 = vtanh.f32 %v889_v2  ;;  %v1639_v14 = vpop.eup %1638 }
 0x298   : > { %1654 = vrcp.f32 %v922_v5  ;;  %v984_v5 = vpop.permute.xlu0 %983 }
 0x299   : > { %1656 = vtanh.f32 %v887_v4  ;;  %v1641_v15 = vpop.eup %1640 }
 0x29a   : > { %1658 = vtanh.f32 %v883_v6 }
 0x29b   : > { %1660 = vtanh.f32 %v881_v8  ;;  %v1643_v16 = vpop.eup %1642 }
 0x29c   : > { %1662 = vtanh.f32 %v877_v9 }
 0x29d   : > { %1664 = vtanh.f32 %v875_v11  ;;  %v1645_v17 = vpop.eup %1644 }
 0x29e   : > { %1666 = vtanh.f32 %v871_v12 }
 0x29f   : > { %1668 = vtanh.f32 %v869_v13  ;;  %v1647_v20 = vpop.eup %1646 }
 0x2a1   : > { %v1649_v27 = vpop.eup %1648 }
 0x2a3   : > { %v1651_v30 = vpop.eup %1650 }
 0x2a4   : > { %v1653_v39 = vpop.eup %1652 }
 0x2a5   : > { %v1655_v40 = vpop.eup %1654 }
 0x2a6   : > { %v1657_v41 = vpop.eup %1656  ;;  %v954_v42 = vmul.f32 %v1655_v40, %v1653_v39 }
 0x2a7   : > { %v1659_v43 = vpop.eup %1658  ;;  %v953_v35 = vmul.f32 %v1657_v41, %v1651_v30 }
 0x2a8   : > { %v1661_v44 = vpop.eup %1660  ;;  %1060 = vmatprep.subr.mxu1 %v954_v42  ;;  %v952_v45 = vmul.f32 %v1659_v43, %v1649_v27 }
 0x2a9   : > { %v1663_v46 = vpop.eup %1662  ;;  %1061 = vmatpush1.msra.mxu1 %v953_v35  ;;  %v951_v47 = vmul.f32 %v1661_v44, %v1647_v20  ;;  %v994_v20 = vpop.permute.xlu0 %993 }
 0x2aa   : > { %v1665_v48 = vpop.eup %1664  ;;  %1062 = vmatprep.subr.mxu1 %v952_v45  ;;  %v950_v49 = vmul.f32 %v1663_v46, %v1645_v17 }
 0x2ab   : > { %v1667_v50 = vpop.eup %1666  ;;  %1063 = vmatpush1.msra.mxu1 %v951_v47  ;;  %v949_v51 = vmul.f32 %v1665_v48, %v1643_v16 }
 0x2ac   : > { %v1669_v52 = vpop.eup %1668  ;;  %1064 = vmatprep.subr.mxu1 %v950_v49  ;;  %v948_v53 = vmul.f32 %v1667_v50, %v1641_v15 }
 0x2ad   : > { %1065 = vmatpush1.msra.mxu1 %v949_v51  ;;  %v947_v22 = vmul.f32 %v1669_v52, %v1639_v14 }
 0x2ae   : > { %1066 = vmatprep.subr.mxu1 %v948_v53 }
 0x2af   : > { %1067 = vmatpush1.msra.mxu1 %v947_v22 }
 0x2b0   : > { %1465 = vmatmul.mubr.msk.f32.vlgmr.msra.gmra.mxu1 %vm1011_vm5, %v955_v21 }
 0x2b1   : > { %1106 = vmatprep.mubr.f32.mxu1 %v1922_v38 }
 0x2b4   : > { %1466 = vmatmul.mubr.msk.f32.gmra.mxu1 %vm1011_vm5, %v956_v29 }
 0x2b5   : > { %1112 = vmatprep.mubr.f32.mxu1 %v1922_v38 }
 0x2b8   : > { %1467 = vmatmul.mubr.msk.f32.gmra.mxu1 %vm1011_vm5, %v957_v54 }
 0x2b9   : > { %1118 = vmatprep.mubr.f32.mxu1 %v1922_v38 }
 0x2bc   : > { %1468 = vmatmul.mubr.msk.f32.gmra.mxu1 %vm1011_vm5, %v958_v28 }
 0x2bd   : > { %1124 = vmatprep.mubr.f32.mxu1 %v1922_v38 }
 0x2c0   : > { %1469 = vmatmul.mubr.msk.f32.gmra.mxu1 %vm1011_vm5, %v959_v32 }
 0x2c1   : > { %1130 = vmatprep.mubr.f32.mxu1 %v1922_v38 }
 0x2c4   : > { %1470 = vmatmul.mubr.msk.f32.gmra.mxu1 %vm1011_vm5, %v960_v55 }
 0x2c5   : > { %1136 = vmatprep.mubr.f32.mxu1 %v1922_v38 }
 0x2c8   : > { %1471 = vmatmul.mubr.msk.f32.gmra.mxu1 %vm1011_vm5, %v961_v31 }
 0x2c9   : > { %1142 = vmatprep.mubr.f32.mxu1 %v1922_v38 }
 0x2cc   : > { %1472 = vmatmul.mubr.msk.f32.gmra.mxu1 %vm1011_vm5, %v962_v37 }
 0x370   : > { %v1102_v36 = vpop.f32.mrf.mxu1 }
 0x371   : > { %v1103_v57 = vadd.f32 %v1102_v36, %v974_v56 }
 0x372   : > { %v1104_v59 = vpop.f32.mrf.mxu1 }
 0x373   : > { %v1149_v60 = vadd.f32 %v1103_v57, %v2280_v33  ;;  %v1105_v61 = vadd.f32 %v1104_v59, %v974_v56 }
 0x374   : > { %v1108_v63 = vpop.f32.mrf.mxu1 }
 0x375   : > { %v1157_v0 = vmul.f32 0.70710677, %v1149_v60  ;;  %v1150_v38 = vadd.f32 %v1105_v61, %v2283_v34  ;;  %v1109_v58 = vadd.f32 %v1108_v63, %v979_v62 }
 0x376   : > { %v1110_v1 = vpop.f32.mrf.mxu1 }
 0x377   : > { %1165 = vst [vmem:[%s2206_s25] sm:$0xff] %v1157_v0  ;;  %v1158_v2 = vmul.f32 0.70710677, %v1150_v38  ;;  %v1151_v3 = vadd.f32 %v1109_v58, %v2250_v25  ;;  %v1111_v4 = vadd.f32 %v1110_v1, %v979_v62  ;;  %v989_v25 = vpop.permute.xlu1 %988 }
 0x378   : > { %v1114_v6 = vpop.f32.mrf.mxu1 }
 0x379   : > { %1166 = vst [vmem:[%s2206_s25 + $0x8] sm:$0xff] %v1158_v2  ;;  %v1159_v33 = vmul.f32 0.70710677, %v1151_v3  ;;  %v1152_v7 = vadd.f32 %v1111_v4, %v2253_v26  ;;  %v1115_v8 = vadd.f32 %v1114_v6, %v984_v5 }
 0x37a   : > { %v1116_v34 = vpop.f32.mrf.mxu1 }
 0x37b   : > { %1167 = vst [vmem:[%s2206_s25 + $0x10] sm:$0xff] %v1159_v33  ;;  %v1160_v9 = vmul.f32 0.70710677, %v1152_v7  ;;  %v1153_v10 = vadd.f32 %v1115_v8, %v2240_v23  ;;  %v1117_v11 = vadd.f32 %v1116_v34, %v984_v5  ;;  %v999_v42 = vpop.permute.xlu1 %998 }
 0x37c   : > { %v1120_v12 = vpop.f32.mrf.mxu1 }
 0x37d   : > { %1168 = vst [vmem:[%s2206_s25 + $0x18] sm:$0xff] %v1160_v9  ;;  %v1161_v13 = vmul.f32 0.70710677, %v1153_v10  ;;  %v1154_v26 = vadd.f32 %v1117_v11, %v2243_v24  ;;  %v1121_v14 = vadd.f32 %v1120_v12, %v989_v25 }
 0x37e   : > { %v1122_v15 = vpop.f32.mrf.mxu1 }
 0x37f   : > { %1169 = vst [vmem:[%s2206_s25 + $0x20] sm:$0xff] %v1161_v13  ;;  %v1162_v16 = vmul.f32 0.70710677, %v1154_v26  ;;  %v1155_v23 = vadd.f32 %v1121_v14, %v2224_v18  ;;  %v1123_v17 = vadd.f32 %v1122_v15, %v989_v25 }
 0x380   : > { %v1126_v27 = vpop.f32.mrf.mxu1 }
 0x381   : > { %1170 = vst [vmem:[%s2206_s25 + $0x28] sm:$0xff] %v1162_v16  ;;  %v1163_v30 = vmul.f32 0.70710677, %v1155_v23  ;;  %v1156_v24 = vadd.f32 %v1123_v17, %v2227_v19  ;;  %v1127_v39 = vadd.f32 %v1126_v27, %v994_v20 }
 0x382   : > { %v1128_v18 = vpop.f32.mrf.mxu1 }
 0x383   : > { %1171 = vst [vmem:[%s2206_s25 + $0x30] sm:$0xff] %v1163_v30  ;;  %v1164_v40 = vmul.f32 0.70710677, %v1156_v24  ;;  %1173 = vst [vmem:[%s2208_s20] sm:$0xff] %v1127_v39  ;;  %v1129_v41 = vadd.f32 %v1128_v18, %v994_v20 }
 0x384   : > { %v1132_v19 = vpop.f32.mrf.mxu1 }
 0x385   : > { %1172 = vst [vmem:[%s2206_s25 + $0x38] sm:$0xff] %v1164_v40  ;;  %1174 = vst [vmem:[%s2208_s20 + $0x8] sm:$0xff] %v1129_v41  ;;  %v1133_v43 = vadd.f32 %v1132_v19, %v999_v42 }
 0x386   : > { %v1134_v35 = vpop.f32.mrf.mxu1 }
 0x387   : > { %1761 = shalt.err (!%p1758_p3)
}
 0x388   : > { %s1762_s25 = scalar_lea.hbm %s2514_s30, 1024  ;;  %s1766_s16 = scalar_lea.hbm %s2720_s5, 8192 }
 0x389   : > { %p1763_p6 = scmp.ne.s32.totalorder %s2514_s30, %s1762_s25  ;;  %p1767_p1 = scmp.lt.s32.totalorder %s2514_s30, %s2720_s5 }
 0x38a   : > { %p1768_p4 = scmp.lt.s32.totalorder %s1766_s16, %s1762_s25 }
 0x38b   : > { %p1764_p0 = pnand %p1763_p6, %p2722_p9 }
 0x38c   : > { %p1769_p8 = por %p1768_p4, %p1767_p1 }
 0x38d   : > { %p1765_p10 = pneg %p1764_p0 }
 0x38f   : > { %p1770_p2 = pnand %p1769_p8, %p1765_p10 }
 0x391   : > { %1773 = shalt.err (!%p1770_p2)
}
 0x392   : > { %s1924_s23 = smov 256   ;;  %s1925_s15 = smov 1024   ;;  %1175 = vst [vmem:[%s2208_s20 + $0x10] sm:$0xff] %v1133_v43  ;;  %v1135_v44 = vadd.f32 %v1134_v35, %v999_v42  ;;  %v1004_v45 = vpop.permute.xlu0 %1003  ;;  %v1138_v46 = vpop.f32.mrf.mxu1 }
 0x393   : > { %s1926_s0 = smov 16   ;;  %v1139_v47 = vadd.f32 %v1138_v46, %v1004_v45  ;;  %v1009_v50 = vpop.permute.xlu1 %1008  ;;  %s1228_s4 = sshll.u32 %s2208_s20, 4  ;;  %s2561_s4 = int_to_ptr.vmem [resolvable:$true] %s1228_s4 }
 0x394   : > { %1498 = dma.vmem_to_hbm [thread:$0]  (%p2722_p9), %s2516_s29, 1024, %s2514_s30, %s1190_s26, %s1924_s23, %s1925_s15, %s1926_s0   ;;  %v1140_v48 = vpop.f32.mrf.mxu1 }
 0x395   : > { %1176 = vst [vmem:[%s2208_s20 + $0x18] sm:$0xff] %v1135_v44  ;;  %1177 = vst [vmem:[%s2208_s20 + $0x20] sm:$0xff] %v1139_v47  ;;  %v1141_v49 = vadd.f32 %v1140_v48, %v1004_v45  ;;  %s2723_s26 = sld [smem:[#allocation41_spill]]  ;;  %s1195_s12 = scalar_lea.sflag [#allocation12], %s2176_s19 }
 0x396   : > { %v1144_v51 = vpop.f32.mrf.mxu1  ;;  %s1774_s6 = scalar_lea.vmem %s2561_s4, 1024  ;;  %s1927_s14 = smov [#allocation11]  }
 0x397   : > { %1178 = vst [vmem:[%s2208_s20 + $0x28] sm:$0xff] %v1141_v49  ;;  %v1145_v52 = vadd.f32 %v1144_v51, %v1009_v50  ;;  %p1775_p11 = scmp.ne.s32.totalorder %s2561_s4, %s1774_s6  ;;  %s1778_s25 = sshll.u32 %s1927_s14, 4  ;;  %s1779_s25 = int_to_ptr.vmem [resolvable:$false] %s1778_s25 }
 0x398   : > { %v1146_v53 = vpop.f32.mrf.mxu1  ;;  %s1780_s7 = scalar_lea.vmem %s1779_s25, 2048  ;;  %p1781_p7 = scmp.lt.s32.totalorder %s2561_s4, %s1779_s25 }
 0x399   : > { %1179 = vst [vmem:[%s2208_s20 + $0x30] sm:$0xff] %v1145_v52  ;;  %v1147_v22 = vadd.f32 %v1146_v53, %v1009_v50  ;;  %p1776_p12 = pnand %p1775_p11, %p2722_p9  ;;  %p1782_p13 = scmp.lt.s32.totalorder %s1780_s7, %s1774_s6 }
 0x39b   : > { %s2559_s21 = scalar_lea.hbm %s2723_s26, %s1477_s9  ;;  %1180 = vst [vmem:[%s2208_s20 + $0x38] sm:$0xff] %v1147_v22  ;;  %p1777_p5 = pneg %p1776_p12 }
 0x39c   : > { %p1783_p3 = por %p1782_p13, %p1781_p7 }
 0x39e   : > { %p1784_p6 = pnand %p1783_p3, %p1777_p5 }
 0x3a0   : > { %1787 = shalt.err (!%p1784_p6)
}
 0x3a1   : > { %s1788_s20 = scalar_lea.hbm %s2559_s21, 1024  ;;  %s1792_s8 = scalar_lea.hbm %s2723_s26, 8192 }
 0x3a2   : > { %p1789_p0 = scmp.ne.s32.totalorder %s2559_s21, %s1788_s20  ;;  %p1793_p4 = scmp.lt.s32.totalorder %s2559_s21, %s2723_s26 }
 0x3a3   : > { %p1794_p8 = scmp.lt.s32.totalorder %s1792_s8, %s1788_s20 }
 0x3a4   : > { %p1790_p10 = pnand %p1789_p0, %p2722_p9 }
 0x3a5   : > { %p1795_p2 = por %p1794_p8, %p1793_p4 }
 0x3a6   : > { %p1791_p1 = pneg %p1790_p10 }
 0x3a8   : > { %p1796_p11 = pnand %p1795_p2, %p1791_p1 }
 0x3aa   : > { %1799 = shalt.err (!%p1796_p11)
}
 0x3ab   : > { %1499 = dma.vmem_to_hbm [thread:$0]  (%p2722_p9), %s2561_s4, 1024, %s2559_s21, %s1195_s12, %s1924_s23, %s1925_s15, %s1926_s0  }
 0x3ac PF: > { %s2724_s2 = sld [smem:[#allocation24_spill]] }
 0x3ad   : > { %s2725_s17 = sld [smem:[#allocation19_spill]] }
 0x3ae   : > { %s2726_s29 = sld [smem:[#allocation32_spill]] }
 0x3b2   : > { %p1515_p12 = scmp.ge.s32.totalorder %s2724_s2, 2 }
 0x3b3   : > { %s1243_s30 = sand.u32 1, %s2725_s17  }
 0x3b4   : > { %p2727_p5 = scmp.ne.s32.totalorder %s2726_s29, 0  ;;  %s1244_s6 = scalar_lea.sflag [#allocation5], %s1243_s30 }
 0x3b6   : > { %p1507_p7 = pnand %p1515_p12, %p2727_p5 }
 0x3b8   : > { %p1508_p13 = pneg %p1507_p7 }
 0x3ba   : > { %1857 = dma.done.wait (%p1508_p13), %s1244_s6, 1024  }
 0x3bb   : > { %1859 = vsyncadd (%p1508_p13), %s1244_s6, 4294966272  ;;  %s1253_s14 = scalar_lea.sflag [#allocation12], %s1243_s30 }
 0x3bc   : > { %1861 = dma.done.wait (%p1508_p13), %s1253_s14, 1024  }
 0x3bd   : > { %1863 = vsyncadd (%p1508_p13), %s1253_s14, 4294966272  ;;  %s32_s19 = sadd.s32 1, %s2724_s2   ;;  %s2728_s30 = sld [smem:[#allocation18_spill]] }
 0x3be   : > { %p29_p3 = scmp.ge.s32.totalorder %s32_s19, 10   ;;  %s2729_s23 = sld [smem:[#allocation33_spill]] }
 0x3bf   : > { %s2730_s15 = sld [smem:[#allocation20_spill]]  ;;  %s2735_s10 = smov %s1874_s11 }
 0x3c0   : > { %s2731_s14 = sld [smem:[#allocation29_spill]]  ;;  %s2737_s12 = smov %s1882_s13 }
 0x3c1   : > { %s2732_s0 = sld [smem:[#allocation23_spill]]  ;;  %s2740_s16 = smov %s1902_s18 }
 0x3c2   : > { %s2733_s17 = sld [smem:[#allocation26_spill]] }
 0x3c3   : > { %s2734_s4 = sld [smem:[#allocation27_spill]] }
 0x3c4   : > { %s2736_s11 = smov %s2729_s23 }
 0x3c5   : > { %s2738_s13 = smov %s2730_s15  ;;  %31 = sbr.rel (!%p29_p3) target bundleno = 22 (0x16), region = 169 }
 0x3c7   : > { %s2739_s15 = smov %s2732_s0 }
 0x3c9   : > { %s2741_s18 = smov %s2734_s4 }
 0x3ca   :  { %1258 = vsyncpa [#allocation4], 1 }
 0x3cb   :  { %1260 = vsyncpa [#allocation4 + $0x1], 1 }
 0x3cc   :  { %1261 = vsyncpa [#allocation7], 1 }
 0x3cd   :  { %1263 = vsyncpa [#allocation7 + $0x1], 1 }
 0x3ce   :  { %1264 = vsyncpa [#allocation5], 1 }
 0x3cf   :  { %1266 = vsyncpa [#allocation5 + $0x1], 1 }
 0x3d0   :  { %1267 = vsyncpa [#allocation12], 1 }
 0x3d1   :  { %1269 = vsyncpa [#allocation12 + $0x1], 1 }

</bundles_post_ra>
